<compile_context>
chip_gen: v5e
topology: v5e:2x2
jax: 0.10.0
libtpu: 0.0.40
codegen_flags: <defaults>
</compile_context>

<pallas_src>
import functools

import jax
import jax.numpy as jnp
from jax.experimental import pallas as pl
from jax.experimental.pallas import tpu as pltpu


def make_chord_lstm_kernel(*, num_layers, hidden_size, seq_len, batch,
                           two_vocab):
    H = hidden_size
    T = seq_len
    B = batch
    L = num_layers
    TB = T * B

    def kernel(idx_ref, w0_ref, wstack_ref, bias_ref, dec_ref, out_ref):
        # ---- fused embedding lookup + layer-0 input projection -------------
        # Two-hot mask: chord indices were pre-offset by root_vocab in the
        # wrapper, so one iota compare per column suffices.  (Out-of-range
        # indices silently give a zero embedding, unlike nn.Embedding.)
        iota = jax.lax.broadcasted_iota(jnp.int32, (TB, two_vocab), 1)
        twohot = ((idx_ref[:, 0:1] == iota).astype(jnp.float32)
                  + (idx_ref[:, 1:2] == iota).astype(jnp.float32))   # (TB,Vr+Vc)
        gates_ih0 = (jnp.dot(twohot, w0_ref[...],
                             preferred_element_type=jnp.float32)
                     + bias_ref[0:1, :])                             # (TB,4H)

        # ---- hoisted, loop-invariant weight reads ---------------------------
        # wstack rows: [w_hh_0 .. w_hh_{L-1}, w_ih_1 .. w_ih_{L-1}], each (H,4H)
        w_hh = [wstack_ref[l * H:(l + 1) * H, :] for l in range(L)]
        w_ih = [None] + [wstack_ref[(L + l - 1) * H:(L + l) * H, :]
                         for l in range(1, L)]
        bias = [bias_ref[l:l + 1, :] for l in range(L)]

        h = [jnp.zeros((B, H), jnp.float32) for _ in range(L)]
        c = [jnp.zeros((B, H), jnp.float32) for _ in range(L)]

        # ---- wavefront recurrence: layer l handles timestep t = s - l -------
        # All gate inputs at a wave step read the h values produced at the
        # previous wave step (computed before any h/c is overwritten), so the
        # per-step matmuls of different layers are independent and overlap.
        for s in range(T + L - 1):
            active = [l for l in range(L) if 0 <= s - l < T]
            g_list = []
            for l in active:
                if l == 0:
                    g_in = gates_ih0[s * B:(s + 1) * B, :]           # static slice
                else:
                    g_in = (jnp.dot(h[l - 1], w_ih[l],
                                    preferred_element_type=jnp.float32)
                            + bias[l])
                g_list.append(g_in + jnp.dot(h[l], w_hh[l],
                                             preferred_element_type=jnp.float32))

            # One full sigmoid + one full tanh over all active layers' gates.
            g_all = (g_list[0] if len(g_list) == 1
                     else jnp.concatenate(g_list, axis=0))           # (nact*B,4H)
            sig = jax.nn.sigmoid(g_all)
            tnh = jnp.tanh(g_all)

            for n, l in enumerate(active):
                r0 = n * B
                i_g = sig[r0:r0 + B, 0 * H:1 * H]
                f_g = sig[r0:r0 + B, 1 * H:2 * H]
                g_g = tnh[r0:r0 + B, 2 * H:3 * H]
                o_g = sig[r0:r0 + B, 3 * H:4 * H]
                c[l] = f_g * c[l] + i_g * g_g
                h[l] = o_g * jnp.tanh(c[l])

        # decoder(lstm_out)[:, -1, :] == decoder(h_T of top layer).
        # dec_ref = [w_dec (H rows) ; b_dec (1 row)], zero-padded to 128 lanes.
        out_ref[...] = (jnp.dot(h[L - 1], dec_ref[0:H, :],
                                preferred_element_type=jnp.float32)
                        + dec_ref[H:H + 1, :])

    return kernel


def chord_lstm_forward(src, params, *, embed_size, hidden_size, num_layers,
                       chord_vocab_size):
    """src: (B, T, 2) int32. Returns (B, chord_vocab_size) float32."""
    B, T, _ = src.shape
    E, H = embed_size, hidden_size
    L = num_layers
    root_vocab = params["root_embedding"].shape[0]
    chord_vocab = params["chord_embedding"].shape[0]
    OUT_PAD = 128  # lane-dense decoder output; sliced back after the call

    # ---- param prep (tiny one-time XLA ops; pure weight folding/packing) ----
    # Fold embedding tables through W_ih_0 -> (Vr+Vc, 4H).
    w_ih0 = params["w_ih_0"]
    w0_fused = jnp.concatenate(
        [params["root_embedding"] @ w_ih0[:E, :],
         params["chord_embedding"] @ w_ih0[E:, :]], axis=0)

    # Stack recurrent + inter-layer input weights: w_hh_0..L-1 then w_ih_1..L-1.
    w_stack = jnp.concatenate(
        [params[f"w_hh_{l}"] for l in range(L)]
        + [params[f"w_ih_{l}"] for l in range(1, L)], axis=0)   # ((2L-1)*H, 4H)

    bias_stack = jnp.concatenate(
        [params[f"b_{l}"] for l in range(L)], axis=0)           # (L, 4H)

    # Decoder: pad to 128 output lanes and fold bias in as an extra row.
    pad = OUT_PAD - chord_vocab_size
    dec_pack = jnp.concatenate(
        [jnp.pad(params["w_dec"], ((0, 0), (0, pad))),
         jnp.pad(params["b_dec"], ((0, 0), (0, pad)))], axis=0)  # (H+1, 128)

    # Index plumbing: time-major flat rows (row = t*B + b); chord indices
    # pre-offset by root_vocab for the in-kernel two-hot build.
    roots_tm = jnp.transpose(src[:, :, 0], (1, 0)).reshape(T * B, 1)
    chords_tm = jnp.transpose(src[:, :, 1], (1, 0)).reshape(T * B, 1)
    idx = jnp.concatenate(
        [roots_tm.astype(jnp.int32),
         chords_tm.astype(jnp.int32) + root_vocab], axis=1)     # (TB, 2)

    kernel = make_chord_lstm_kernel(
        num_layers=L, hidden_size=H, seq_len=T, batch=B,
        two_vocab=root_vocab + chord_vocab)

    out = pl.pallas_call(
        kernel,
        out_shape=jax.ShapeDtypeStruct((B, OUT_PAD), jnp.float32),
        in_specs=[pl.BlockSpec(memory_space=pltpu.MemorySpace.VMEM)] * 5,
        out_specs=pl.BlockSpec(memory_space=pltpu.MemorySpace.VMEM),
    )(idx, w0_fused, w_stack, bias_stack, dec_pack)
    return out[:, :chord_vocab_size]


def reference_forward(src, params, *, embed_size, hidden_size, num_layers):
    """Pure-JAX reference (PyTorch LSTM semantics) for validation."""
    H = hidden_size
    roots = src[:, :, 0]
    chords = src[:, :, 1]
    x = jnp.concatenate(
        [jnp.take(params["root_embedding"], roots, axis=0),
         jnp.take(params["chord_embedding"], chords, axis=0)], axis=-1)
    B, T, _ = x.shape
    layer_in = x.astype(jnp.float32)
    for l in range(num_layers):
        w_ih, w_hh, b = params[f"w_ih_{l}"], params[f"w_hh_{l}"], params[f"b_{l}"]
        h = jnp.zeros((B, H), jnp.float32)
        c = jnp.zeros((B, H), jnp.float32)
        outs = []
        for t in range(T):
            gates = layer_in[:, t, :] @ w_ih + h @ w_hh + b
            i = jax.nn.sigmoid(gates[:, 0 * H:1 * H])
            f = jax.nn.sigmoid(gates[:, 1 * H:2 * H])
            g = jnp.tanh(gates[:, 2 * H:3 * H])
            o = jax.nn.sigmoid(gates[:, 3 * H:4 * H])
            c = f * c + i * g
            h = o * jnp.tanh(c)
            outs.append(h)
        layer_in = jnp.stack(outs, axis=1)
    return layer_in[:, -1, :] @ params["w_dec"] + params["b_dec"]


def init_params(key, *, root_vocab_size, chord_vocab_size, embed_size,
                hidden_size, num_layers):
    E, H = embed_size, hidden_size
    keys = jax.random.split(key, 4 + 4 * num_layers)
    k = iter(keys)
    scale = 0.1
    params = {
        "root_embedding": scale * jax.random.normal(
            next(k), (root_vocab_size, E), jnp.float32),
        "chord_embedding": scale * jax.random.normal(
            next(k), (chord_vocab_size, E), jnp.float32),
    }
    for l in range(num_layers):
        in_dim = 2 * E if l == 0 else H
        params[f"w_ih_{l}"] = scale * jax.random.normal(
            next(k), (in_dim, 4 * H), jnp.float32)
        params[f"w_hh_{l}"] = scale * jax.random.normal(
            next(k), (H, 4 * H), jnp.float32)
        b_ih = scale * jax.random.normal(next(k), (1, 4 * H), jnp.float32)
        b_hh = scale * jax.random.normal(next(k), (1, 4 * H), jnp.float32)
        params[f"b_{l}"] = b_ih + b_hh   # PyTorch adds both biases
    params["w_dec"] = scale * jax.random.normal(
        next(k), (H, chord_vocab_size), jnp.float32)
    params["b_dec"] = scale * jax.random.normal(
        next(k), (1, chord_vocab_size), jnp.float32)
    return params


if __name__ == "__main__":
    # Small shapes consistent with the module's forward.
    root_vocab_size = 13
    chord_vocab_size = 24
    embed_size = 16
    hidden_size = 32
    num_layers = 2
    B, T = 2, 8

    key = jax.random.PRNGKey(0)
    k_params, k_roots, k_chords = jax.random.split(key, 3)

    params = init_params(
        k_params,
        root_vocab_size=root_vocab_size,
        chord_vocab_size=chord_vocab_size,
        embed_size=embed_size,
        hidden_size=hidden_size,
        num_layers=num_layers,
    )

    roots = jax.random.randint(k_roots, (B, T), 0, root_vocab_size, jnp.int32)
    chords = jax.random.randint(k_chords, (B, T), 0, chord_vocab_size, jnp.int32)
    src = jnp.stack([roots, chords], axis=-1)   # (B, T, 2)

    fwd = functools.partial(
        chord_lstm_forward,
        embed_size=embed_size,
        hidden_size=hidden_size,
        num_layers=num_layers,
        chord_vocab_size=chord_vocab_size,
    )

    out = jax.block_until_ready(fwd(src, params))
    assert out.shape == (B, chord_vocab_size), out.shape

    ref = reference_forward(
        src, params,
        embed_size=embed_size,
        hidden_size=hidden_size,
        num_layers=num_layers,
    )
    assert jnp.allclose(out, ref, atol=5e-4, rtol=5e-4), (
        "mismatch vs pure-JAX reference")

    print("KERNEL_OK")
</pallas_src>

<mosaic_0001>
module attributes {stable_mosaic.version = 11 : i64} {
  func.func @kernel(%arg0: memref<16x2xi32, #tpu.memory_space<vmem>>, %arg1: memref<37x128xf32, #tpu.memory_space<vmem>>, %arg2: memref<96x128xf32, #tpu.memory_space<vmem>>, %arg3: memref<2x128xf32, #tpu.memory_space<vmem>>, %arg4: memref<33x128xf32, #tpu.memory_space<vmem>>, %arg5: memref<2x128xf32, #tpu.memory_space<vmem>>) attributes {dimension_semantics = [], scalar_prefetch = 0 : i64, scratch_operands = 0 : i64, tpu.core_type = #tpu.core_type<tc>} {
    %0 = tpu.iota {dimensions = array<i32: 1>} : vector<16x37xi32>
    %c0 = arith.constant 0 : index
    %c0_0 = arith.constant 0 : index
    %1 = vector.load %arg0[%c0, %c0_0] : memref<16x2xi32, #tpu.memory_space<vmem>>, vector<16x1xi32>
    %2 = vector.broadcast %1 : vector<16x1xi32> to vector<16x37xi32>
    %3 = arith.cmpi eq, %2, %0 : vector<16x37xi32>
    %4 = arith.extui %3 : vector<16x37xi1> to vector<16x37xi32>
    %5 = arith.sitofp %4 : vector<16x37xi32> to vector<16x37xf32>
    %c0_1 = arith.constant 0 : index
    %c1 = arith.constant 1 : index
    %6 = vector.load %arg0[%c0_1, %c1] : memref<16x2xi32, #tpu.memory_space<vmem>>, vector<16x1xi32>
    %7 = vector.broadcast %6 : vector<16x1xi32> to vector<16x37xi32>
    %8 = arith.cmpi eq, %7, %0 : vector<16x37xi32>
    %9 = arith.extui %8 : vector<16x37xi1> to vector<16x37xi32>
    %10 = arith.sitofp %9 : vector<16x37xi32> to vector<16x37xf32>
    %11 = arith.addf %5, %10 : vector<16x37xf32>
    %c0_2 = arith.constant 0 : index
    %c0_3 = arith.constant 0 : index
    %12 = vector.load %arg1[%c0_2, %c0_3] : memref<37x128xf32, #tpu.memory_space<vmem>>, vector<37x128xf32>
    %cst = arith.constant dense<0.000000e+00> : vector<16x128xf32>
    %13 = tpu.matmul %11, %12, %cst {dimension_numbers = #tpu.dot_dimension_numbers<[1], [0], [0], [1], [0, 0, 1, 1], [], []>} : vector<16x37xf32>, vector<37x128xf32>, vector<16x128xf32> -> vector<16x128xf32>
    %c0_4 = arith.constant 0 : index
    %c0_5 = arith.constant 0 : index
    %14 = vector.load %arg3[%c0_4, %c0_5] : memref<2x128xf32, #tpu.memory_space<vmem>>, vector<1x128xf32>
    %15 = vector.broadcast %14 : vector<1x128xf32> to vector<16x128xf32>
    %16 = arith.addf %13, %15 : vector<16x128xf32>
    %c0_6 = arith.constant 0 : index
    %c0_7 = arith.constant 0 : index
    %17 = vector.load %arg2[%c0_6, %c0_7] : memref<96x128xf32, #tpu.memory_space<vmem>>, vector<32x128xf32>
    %c32 = arith.constant 32 : index
    %c0_8 = arith.constant 0 : index
    %18 = vector.load %arg2[%c32, %c0_8] : memref<96x128xf32, #tpu.memory_space<vmem>>, vector<32x128xf32>
    %c64 = arith.constant 64 : index
    %c0_9 = arith.constant 0 : index
    %19 = vector.load %arg2[%c64, %c0_9] : memref<96x128xf32, #tpu.memory_space<vmem>>, vector<32x128xf32>
    %c1_10 = arith.constant 1 : index
    %c0_11 = arith.constant 0 : index
    %20 = vector.load %arg3[%c1_10, %c0_11] : memref<2x128xf32, #tpu.memory_space<vmem>>, vector<1x128xf32>
    %cst_12 = arith.constant 0.000000e+00 : f32
    %21 = vector.broadcast %cst_12 : f32 to vector<2x32xf32>
    %cst_13 = arith.constant 0.000000e+00 : f32
    %22 = vector.broadcast %cst_13 : f32 to vector<2x32xf32>
    %cst_14 = arith.constant 0.000000e+00 : f32
    %23 = vector.broadcast %cst_14 : f32 to vector<2x32xf32>
    %cst_15 = arith.constant 0.000000e+00 : f32
    %24 = vector.broadcast %cst_15 : f32 to vector<2x32xf32>
    %25 = vector.extract_strided_slice %16 {offsets = [0, 0], sizes = [2, 128], strides = [1, 1]} : vector<16x128xf32> to vector<2x128xf32>
    %cst_16 = arith.constant dense<0.000000e+00> : vector<2x128xf32>
    %26 = tpu.matmul %21, %17, %cst_16 {dimension_numbers = #tpu.dot_dimension_numbers<[1], [0], [0], [1], [0, 0, 1, 1], [], []>} : vector<2x32xf32>, vector<32x128xf32>, vector<2x128xf32> -> vector<2x128xf32>
    %27 = arith.addf %25, %26 : vector<2x128xf32>
    %28 = arith.negf %27 : vector<2x128xf32>
    %29 = math.exp %28 : vector<2x128xf32>
    %cst_17 = arith.constant 1.000000e+00 : f32
    %30 = vector.broadcast %cst_17 : f32 to vector<2x128xf32>
    %31 = arith.addf %30, %29 : vector<2x128xf32>
    %32 = arith.divf %30, %31 : vector<2x128xf32>
    %33 = math.tanh %27 : vector<2x128xf32>
    %34 = vector.extract_strided_slice %32 {offsets = [0, 0], sizes = [2, 32], strides = [1, 1]} : vector<2x128xf32> to vector<2x32xf32>
    %35 = vector.extract_strided_slice %32 {offsets = [0, 32], sizes = [2, 32], strides = [1, 1]} : vector<2x128xf32> to vector<2x32xf32>
    %36 = vector.extract_strided_slice %33 {offsets = [0, 64], sizes = [2, 32], strides = [1, 1]} : vector<2x128xf32> to vector<2x32xf32>
    %37 = vector.extract_strided_slice %32 {offsets = [0, 96], sizes = [2, 32], strides = [1, 1]} : vector<2x128xf32> to vector<2x32xf32>
    %38 = arith.mulf %35, %23 : vector<2x32xf32>
    %39 = arith.mulf %34, %36 : vector<2x32xf32>
    %40 = arith.addf %38, %39 : vector<2x32xf32>
    %41 = math.tanh %40 : vector<2x32xf32>
    %42 = arith.mulf %37, %41 : vector<2x32xf32>
    %43 = vector.extract_strided_slice %16 {offsets = [2, 0], sizes = [2, 128], strides = [1, 1]} : vector<16x128xf32> to vector<2x128xf32>
    %cst_18 = arith.constant dense<0.000000e+00> : vector<2x128xf32>
    %44 = tpu.matmul %42, %17, %cst_18 {dimension_numbers = #tpu.dot_dimension_numbers<[1], [0], [0], [1], [0, 0, 1, 1], [], []>} : vector<2x32xf32>, vector<32x128xf32>, vector<2x128xf32> -> vector<2x128xf32>
    %45 = arith.addf %43, %44 : vector<2x128xf32>
    %cst_19 = arith.constant dense<0.000000e+00> : vector<2x128xf32>
    %46 = tpu.matmul %42, %19, %cst_19 {dimension_numbers = #tpu.dot_dimension_numbers<[1], [0], [0], [1], [0, 0, 1, 1], [], []>} : vector<2x32xf32>, vector<32x128xf32>, vector<2x128xf32> -> vector<2x128xf32>
    %47 = vector.broadcast %20 : vector<1x128xf32> to vector<2x128xf32>
    %48 = arith.addf %46, %47 : vector<2x128xf32>
    %cst_20 = arith.constant dense<0.000000e+00> : vector<2x128xf32>
    %49 = tpu.matmul %22, %18, %cst_20 {dimension_numbers = #tpu.dot_dimension_numbers<[1], [0], [0], [1], [0, 0, 1, 1], [], []>} : vector<2x32xf32>, vector<32x128xf32>, vector<2x128xf32> -> vector<2x128xf32>
    %50 = arith.addf %48, %49 : vector<2x128xf32>
    %51 = tpu.concatenate %45, %50 in 0 : vector<2x128xf32>, vector<2x128xf32> -> vector<4x128xf32>
    %52 = arith.negf %51 : vector<4x128xf32>
    %53 = math.exp %52 : vector<4x128xf32>
    %cst_21 = arith.constant 1.000000e+00 : f32
    %54 = vector.broadcast %cst_21 : f32 to vector<4x128xf32>
    %55 = arith.addf %54, %53 : vector<4x128xf32>
    %56 = arith.divf %54, %55 : vector<4x128xf32>
    %57 = math.tanh %51 : vector<4x128xf32>
    %58 = vector.extract_strided_slice %56 {offsets = [0, 0], sizes = [2, 32], strides = [1, 1]} : vector<4x128xf32> to vector<2x32xf32>
    %59 = vector.extract_strided_slice %56 {offsets = [0, 32], sizes = [2, 32], strides = [1, 1]} : vector<4x128xf32> to vector<2x32xf32>
    %60 = vector.extract_strided_slice %57 {offsets = [0, 64], sizes = [2, 32], strides = [1, 1]} : vector<4x128xf32> to vector<2x32xf32>
    %61 = vector.extract_strided_slice %56 {offsets = [0, 96], sizes = [2, 32], strides = [1, 1]} : vector<4x128xf32> to vector<2x32xf32>
    %62 = arith.mulf %59, %40 : vector<2x32xf32>
    %63 = arith.mulf %58, %60 : vector<2x32xf32>
    %64 = arith.addf %62, %63 : vector<2x32xf32>
    %65 = math.tanh %64 : vector<2x32xf32>
    %66 = arith.mulf %61, %65 : vector<2x32xf32>
    %67 = vector.extract_strided_slice %56 {offsets = [2, 0], sizes = [2, 32], strides = [1, 1]} : vector<4x128xf32> to vector<2x32xf32>
    %68 = vector.extract_strided_slice %56 {offsets = [2, 32], sizes = [2, 32], strides = [1, 1]} : vector<4x128xf32> to vector<2x32xf32>
    %69 = vector.extract_strided_slice %57 {offsets = [2, 64], sizes = [2, 32], strides = [1, 1]} : vector<4x128xf32> to vector<2x32xf32>
    %70 = vector.extract_strided_slice %56 {offsets = [2, 96], sizes = [2, 32], strides = [1, 1]} : vector<4x128xf32> to vector<2x32xf32>
    %71 = arith.mulf %68, %24 : vector<2x32xf32>
    %72 = arith.mulf %67, %69 : vector<2x32xf32>
    %73 = arith.addf %71, %72 : vector<2x32xf32>
    %74 = math.tanh %73 : vector<2x32xf32>
    %75 = arith.mulf %70, %74 : vector<2x32xf32>
    %76 = vector.extract_strided_slice %16 {offsets = [4, 0], sizes = [2, 128], strides = [1, 1]} : vector<16x128xf32> to vector<2x128xf32>
    %cst_22 = arith.constant dense<0.000000e+00> : vector<2x128xf32>
    %77 = tpu.matmul %66, %17, %cst_22 {dimension_numbers = #tpu.dot_dimension_numbers<[1], [0], [0], [1], [0, 0, 1, 1], [], []>} : vector<2x32xf32>, vector<32x128xf32>, vector<2x128xf32> -> vector<2x128xf32>
    %78 = arith.addf %76, %77 : vector<2x128xf32>
    %cst_23 = arith.constant dense<0.000000e+00> : vector<2x128xf32>
    %79 = tpu.matmul %66, %19, %cst_23 {dimension_numbers = #tpu.dot_dimension_numbers<[1], [0], [0], [1], [0, 0, 1, 1], [], []>} : vector<2x32xf32>, vector<32x128xf32>, vector<2x128xf32> -> vector<2x128xf32>
    %80 = vector.broadcast %20 : vector<1x128xf32> to vector<2x128xf32>
    %81 = arith.addf %79, %80 : vector<2x128xf32>
    %cst_24 = arith.constant dense<0.000000e+00> : vector<2x128xf32>
    %82 = tpu.matmul %75, %18, %cst_24 {dimension_numbers = #tpu.dot_dimension_numbers<[1], [0], [0], [1], [0, 0, 1, 1], [], []>} : vector<2x32xf32>, vector<32x128xf32>, vector<2x128xf32> -> vector<2x128xf32>
    %83 = arith.addf %81, %82 : vector<2x128xf32>
    %84 = tpu.concatenate %78, %83 in 0 : vector<2x128xf32>, vector<2x128xf32> -> vector<4x128xf32>
    %85 = arith.negf %84 : vector<4x128xf32>
    %86 = math.exp %85 : vector<4x128xf32>
    %cst_25 = arith.constant 1.000000e+00 : f32
    %87 = vector.broadcast %cst_25 : f32 to vector<4x128xf32>
    %88 = arith.addf %87, %86 : vector<4x128xf32>
    %89 = arith.divf %87, %88 : vector<4x128xf32>
    %90 = math.tanh %84 : vector<4x128xf32>
    %91 = vector.extract_strided_slice %89 {offsets = [0, 0], sizes = [2, 32], strides = [1, 1]} : vector<4x128xf32> to vector<2x32xf32>
    %92 = vector.extract_strided_slice %89 {offsets = [0, 32], sizes = [2, 32], strides = [1, 1]} : vector<4x128xf32> to vector<2x32xf32>
    %93 = vector.extract_strided_slice %90 {offsets = [0, 64], sizes = [2, 32], strides = [1, 1]} : vector<4x128xf32> to vector<2x32xf32>
    %94 = vector.extract_strided_slice %89 {offsets = [0, 96], sizes = [2, 32], strides = [1, 1]} : vector<4x128xf32> to vector<2x32xf32>
    %95 = arith.mulf %92, %64 : vector<2x32xf32>
    %96 = arith.mulf %91, %93 : vector<2x32xf32>
    %97 = arith.addf %95, %96 : vector<2x32xf32>
    %98 = math.tanh %97 : vector<2x32xf32>
    %99 = arith.mulf %94, %98 : vector<2x32xf32>
    %100 = vector.extract_strided_slice %89 {offsets = [2, 0], sizes = [2, 32], strides = [1, 1]} : vector<4x128xf32> to vector<2x32xf32>
    %101 = vector.extract_strided_slice %89 {offsets = [2, 32], sizes = [2, 32], strides = [1, 1]} : vector<4x128xf32> to vector<2x32xf32>
    %102 = vector.extract_strided_slice %90 {offsets = [2, 64], sizes = [2, 32], strides = [1, 1]} : vector<4x128xf32> to vector<2x32xf32>
    %103 = vector.extract_strided_slice %89 {offsets = [2, 96], sizes = [2, 32], strides = [1, 1]} : vector<4x128xf32> to vector<2x32xf32>
    %104 = arith.mulf %101, %73 : vector<2x32xf32>
    %105 = arith.mulf %100, %102 : vector<2x32xf32>
    %106 = arith.addf %104, %105 : vector<2x32xf32>
    %107 = math.tanh %106 : vector<2x32xf32>
    %108 = arith.mulf %103, %107 : vector<2x32xf32>
    %109 = vector.extract_strided_slice %16 {offsets = [6, 0], sizes = [2, 128], strides = [1, 1]} : vector<16x128xf32> to vector<2x128xf32>
    %cst_26 = arith.constant dense<0.000000e+00> : vector<2x128xf32>
    %110 = tpu.matmul %99, %17, %cst_26 {dimension_numbers = #tpu.dot_dimension_numbers<[1], [0], [0], [1], [0, 0, 1, 1], [], []>} : vector<2x32xf32>, vector<32x128xf32>, vector<2x128xf32> -> vector<2x128xf32>
    %111 = arith.addf %109, %110 : vector<2x128xf32>
    %cst_27 = arith.constant dense<0.000000e+00> : vector<2x128xf32>
    %112 = tpu.matmul %99, %19, %cst_27 {dimension_numbers = #tpu.dot_dimension_numbers<[1], [0], [0], [1], [0, 0, 1, 1], [], []>} : vector<2x32xf32>, vector<32x128xf32>, vector<2x128xf32> -> vector<2x128xf32>
    %113 = vector.broadcast %20 : vector<1x128xf32> to vector<2x128xf32>
    %114 = arith.addf %112, %113 : vector<2x128xf32>
    %cst_28 = arith.constant dense<0.000000e+00> : vector<2x128xf32>
    %115 = tpu.matmul %108, %18, %cst_28 {dimension_numbers = #tpu.dot_dimension_numbers<[1], [0], [0], [1], [0, 0, 1, 1], [], []>} : vector<2x32xf32>, vector<32x128xf32>, vector<2x128xf32> -> vector<2x128xf32>
    %116 = arith.addf %114, %115 : vector<2x128xf32>
    %117 = tpu.concatenate %111, %116 in 0 : vector<2x128xf32>, vector<2x128xf32> -> vector<4x128xf32>
    %118 = arith.negf %117 : vector<4x128xf32>
    %119 = math.exp %118 : vector<4x128xf32>
    %cst_29 = arith.constant 1.000000e+00 : f32
    %120 = vector.broadcast %cst_29 : f32 to vector<4x128xf32>
    %121 = arith.addf %120, %119 : vector<4x128xf32>
    %122 = arith.divf %120, %121 : vector<4x128xf32>
    %123 = math.tanh %117 : vector<4x128xf32>
    %124 = vector.extract_strided_slice %122 {offsets = [0, 0], sizes = [2, 32], strides = [1, 1]} : vector<4x128xf32> to vector<2x32xf32>
    %125 = vector.extract_strided_slice %122 {offsets = [0, 32], sizes = [2, 32], strides = [1, 1]} : vector<4x128xf32> to vector<2x32xf32>
    %126 = vector.extract_strided_slice %123 {offsets = [0, 64], sizes = [2, 32], strides = [1, 1]} : vector<4x128xf32> to vector<2x32xf32>
    %127 = vector.extract_strided_slice %122 {offsets = [0, 96], sizes = [2, 32], strides = [1, 1]} : vector<4x128xf32> to vector<2x32xf32>
    %128 = arith.mulf %125, %97 : vector<2x32xf32>
    %129 = arith.mulf %124, %126 : vector<2x32xf32>
    %130 = arith.addf %128, %129 : vector<2x32xf32>
    %131 = math.tanh %130 : vector<2x32xf32>
    %132 = arith.mulf %127, %131 : vector<2x32xf32>
    %133 = vector.extract_strided_slice %122 {offsets = [2, 0], sizes = [2, 32], strides = [1, 1]} : vector<4x128xf32> to vector<2x32xf32>
    %134 = vector.extract_strided_slice %122 {offsets = [2, 32], sizes = [2, 32], strides = [1, 1]} : vector<4x128xf32> to vector<2x32xf32>
    %135 = vector.extract_strided_slice %123 {offsets = [2, 64], sizes = [2, 32], strides = [1, 1]} : vector<4x128xf32> to vector<2x32xf32>
    %136 = vector.extract_strided_slice %122 {offsets = [2, 96], sizes = [2, 32], strides = [1, 1]} : vector<4x128xf32> to vector<2x32xf32>
    %137 = arith.mulf %134, %106 : vector<2x32xf32>
    %138 = arith.mulf %133, %135 : vector<2x32xf32>
    %139 = arith.addf %137, %138 : vector<2x32xf32>
    %140 = math.tanh %139 : vector<2x32xf32>
    %141 = arith.mulf %136, %140 : vector<2x32xf32>
    %142 = vector.extract_strided_slice %16 {offsets = [8, 0], sizes = [2, 128], strides = [1, 1]} : vector<16x128xf32> to vector<2x128xf32>
    %cst_30 = arith.constant dense<0.000000e+00> : vector<2x128xf32>
    %143 = tpu.matmul %132, %17, %cst_30 {dimension_numbers = #tpu.dot_dimension_numbers<[1], [0], [0], [1], [0, 0, 1, 1], [], []>} : vector<2x32xf32>, vector<32x128xf32>, vector<2x128xf32> -> vector<2x128xf32>
    %144 = arith.addf %142, %143 : vector<2x128xf32>
    %cst_31 = arith.constant dense<0.000000e+00> : vector<2x128xf32>
    %145 = tpu.matmul %132, %19, %cst_31 {dimension_numbers = #tpu.dot_dimension_numbers<[1], [0], [0], [1], [0, 0, 1, 1], [], []>} : vector<2x32xf32>, vector<32x128xf32>, vector<2x128xf32> -> vector<2x128xf32>
    %146 = vector.broadcast %20 : vector<1x128xf32> to vector<2x128xf32>
    %147 = arith.addf %145, %146 : vector<2x128xf32>
    %cst_32 = arith.constant dense<0.000000e+00> : vector<2x128xf32>
    %148 = tpu.matmul %141, %18, %cst_32 {dimension_numbers = #tpu.dot_dimension_numbers<[1], [0], [0], [1], [0, 0, 1, 1], [], []>} : vector<2x32xf32>, vector<32x128xf32>, vector<2x128xf32> -> vector<2x128xf32>
    %149 = arith.addf %147, %148 : vector<2x128xf32>
    %150 = tpu.concatenate %144, %149 in 0 : vector<2x128xf32>, vector<2x128xf32> -> vector<4x128xf32>
    %151 = arith.negf %150 : vector<4x128xf32>
    %152 = math.exp %151 : vector<4x128xf32>
    %cst_33 = arith.constant 1.000000e+00 : f32
    %153 = vector.broadcast %cst_33 : f32 to vector<4x128xf32>
    %154 = arith.addf %153, %152 : vector<4x128xf32>
    %155 = arith.divf %153, %154 : vector<4x128xf32>
    %156 = math.tanh %150 : vector<4x128xf32>
    %157 = vector.extract_strided_slice %155 {offsets = [0, 0], sizes = [2, 32], strides = [1, 1]} : vector<4x128xf32> to vector<2x32xf32>
    %158 = vector.extract_strided_slice %155 {offsets = [0, 32], sizes = [2, 32], strides = [1, 1]} : vector<4x128xf32> to vector<2x32xf32>
    %159 = vector.extract_strided_slice %156 {offsets = [0, 64], sizes = [2, 32], strides = [1, 1]} : vector<4x128xf32> to vector<2x32xf32>
    %160 = vector.extract_strided_slice %155 {offsets = [0, 96], sizes = [2, 32], strides = [1, 1]} : vector<4x128xf32> to vector<2x32xf32>
    %161 = arith.mulf %158, %130 : vector<2x32xf32>
    %162 = arith.mulf %157, %159 : vector<2x32xf32>
    %163 = arith.addf %161, %162 : vector<2x32xf32>
    %164 = math.tanh %163 : vector<2x32xf32>
    %165 = arith.mulf %160, %164 : vector<2x32xf32>
    %166 = vector.extract_strided_slice %155 {offsets = [2, 0], sizes = [2, 32], strides = [1, 1]} : vector<4x128xf32> to vector<2x32xf32>
    %167 = vector.extract_strided_slice %155 {offsets = [2, 32], sizes = [2, 32], strides = [1, 1]} : vector<4x128xf32> to vector<2x32xf32>
    %168 = vector.extract_strided_slice %156 {offsets = [2, 64], sizes = [2, 32], strides = [1, 1]} : vector<4x128xf32> to vector<2x32xf32>
    %169 = vector.extract_strided_slice %155 {offsets = [2, 96], sizes = [2, 32], strides = [1, 1]} : vector<4x128xf32> to vector<2x32xf32>
    %170 = arith.mulf %167, %139 : vector<2x32xf32>
    %171 = arith.mulf %166, %168 : vector<2x32xf32>
    %172 = arith.addf %170, %171 : vector<2x32xf32>
    %173 = math.tanh %172 : vector<2x32xf32>
    %174 = arith.mulf %169, %173 : vector<2x32xf32>
    %175 = vector.extract_strided_slice %16 {offsets = [10, 0], sizes = [2, 128], strides = [1, 1]} : vector<16x128xf32> to vector<2x128xf32>
    %cst_34 = arith.constant dense<0.000000e+00> : vector<2x128xf32>
    %176 = tpu.matmul %165, %17, %cst_34 {dimension_numbers = #tpu.dot_dimension_numbers<[1], [0], [0], [1], [0, 0, 1, 1], [], []>} : vector<2x32xf32>, vector<32x128xf32>, vector<2x128xf32> -> vector<2x128xf32>
    %177 = arith.addf %175, %176 : vector<2x128xf32>
    %cst_35 = arith.constant dense<0.000000e+00> : vector<2x128xf32>
    %178 = tpu.matmul %165, %19, %cst_35 {dimension_numbers = #tpu.dot_dimension_numbers<[1], [0], [0], [1], [0, 0, 1, 1], [], []>} : vector<2x32xf32>, vector<32x128xf32>, vector<2x128xf32> -> vector<2x128xf32>
    %179 = vector.broadcast %20 : vector<1x128xf32> to vector<2x128xf32>
    %180 = arith.addf %178, %179 : vector<2x128xf32>
    %cst_36 = arith.constant dense<0.000000e+00> : vector<2x128xf32>
    %181 = tpu.matmul %174, %18, %cst_36 {dimension_numbers = #tpu.dot_dimension_numbers<[1], [0], [0], [1], [0, 0, 1, 1], [], []>} : vector<2x32xf32>, vector<32x128xf32>, vector<2x128xf32> -> vector<2x128xf32>
    %182 = arith.addf %180, %181 : vector<2x128xf32>
    %183 = tpu.concatenate %177, %182 in 0 : vector<2x128xf32>, vector<2x128xf32> -> vector<4x128xf32>
    %184 = arith.negf %183 : vector<4x128xf32>
    %185 = math.exp %184 : vector<4x128xf32>
    %cst_37 = arith.constant 1.000000e+00 : f32
    %186 = vector.broadcast %cst_37 : f32 to vector<4x128xf32>
    %187 = arith.addf %186, %185 : vector<4x128xf32>
    %188 = arith.divf %186, %187 : vector<4x128xf32>
    %189 = math.tanh %183 : vector<4x128xf32>
    %190 = vector.extract_strided_slice %188 {offsets = [0, 0], sizes = [2, 32], strides = [1, 1]} : vector<4x128xf32> to vector<2x32xf32>
    %191 = vector.extract_strided_slice %188 {offsets = [0, 32], sizes = [2, 32], strides = [1, 1]} : vector<4x128xf32> to vector<2x32xf32>
    %192 = vector.extract_strided_slice %189 {offsets = [0, 64], sizes = [2, 32], strides = [1, 1]} : vector<4x128xf32> to vector<2x32xf32>
    %193 = vector.extract_strided_slice %188 {offsets = [0, 96], sizes = [2, 32], strides = [1, 1]} : vector<4x128xf32> to vector<2x32xf32>
    %194 = arith.mulf %191, %163 : vector<2x32xf32>
    %195 = arith.mulf %190, %192 : vector<2x32xf32>
    %196 = arith.addf %194, %195 : vector<2x32xf32>
    %197 = math.tanh %196 : vector<2x32xf32>
    %198 = arith.mulf %193, %197 : vector<2x32xf32>
    %199 = vector.extract_strided_slice %188 {offsets = [2, 0], sizes = [2, 32], strides = [1, 1]} : vector<4x128xf32> to vector<2x32xf32>
    %200 = vector.extract_strided_slice %188 {offsets = [2, 32], sizes = [2, 32], strides = [1, 1]} : vector<4x128xf32> to vector<2x32xf32>
    %201 = vector.extract_strided_slice %189 {offsets = [2, 64], sizes = [2, 32], strides = [1, 1]} : vector<4x128xf32> to vector<2x32xf32>
    %202 = vector.extract_strided_slice %188 {offsets = [2, 96], sizes = [2, 32], strides = [1, 1]} : vector<4x128xf32> to vector<2x32xf32>
    %203 = arith.mulf %200, %172 : vector<2x32xf32>
    %204 = arith.mulf %199, %201 : vector<2x32xf32>
    %205 = arith.addf %203, %204 : vector<2x32xf32>
    %206 = math.tanh %205 : vector<2x32xf32>
    %207 = arith.mulf %202, %206 : vector<2x32xf32>
    %208 = vector.extract_strided_slice %16 {offsets = [12, 0], sizes = [2, 128], strides = [1, 1]} : vector<16x128xf32> to vector<2x128xf32>
    %cst_38 = arith.constant dense<0.000000e+00> : vector<2x128xf32>
    %209 = tpu.matmul %198, %17, %cst_38 {dimension_numbers = #tpu.dot_dimension_numbers<[1], [0], [0], [1], [0, 0, 1, 1], [], []>} : vector<2x32xf32>, vector<32x128xf32>, vector<2x128xf32> -> vector<2x128xf32>
    %210 = arith.addf %208, %209 : vector<2x128xf32>
    %cst_39 = arith.constant dense<0.000000e+00> : vector<2x128xf32>
    %211 = tpu.matmul %198, %19, %cst_39 {dimension_numbers = #tpu.dot_dimension_numbers<[1], [0], [0], [1], [0, 0, 1, 1], [], []>} : vector<2x32xf32>, vector<32x128xf32>, vector<2x128xf32> -> vector<2x128xf32>
    %212 = vector.broadcast %20 : vector<1x128xf32> to vector<2x128xf32>
    %213 = arith.addf %211, %212 : vector<2x128xf32>
    %cst_40 = arith.constant dense<0.000000e+00> : vector<2x128xf32>
    %214 = tpu.matmul %207, %18, %cst_40 {dimension_numbers = #tpu.dot_dimension_numbers<[1], [0], [0], [1], [0, 0, 1, 1], [], []>} : vector<2x32xf32>, vector<32x128xf32>, vector<2x128xf32> -> vector<2x128xf32>
    %215 = arith.addf %213, %214 : vector<2x128xf32>
    %216 = tpu.concatenate %210, %215 in 0 : vector<2x128xf32>, vector<2x128xf32> -> vector<4x128xf32>
    %217 = arith.negf %216 : vector<4x128xf32>
    %218 = math.exp %217 : vector<4x128xf32>
    %cst_41 = arith.constant 1.000000e+00 : f32
    %219 = vector.broadcast %cst_41 : f32 to vector<4x128xf32>
    %220 = arith.addf %219, %218 : vector<4x128xf32>
    %221 = arith.divf %219, %220 : vector<4x128xf32>
    %222 = math.tanh %216 : vector<4x128xf32>
    %223 = vector.extract_strided_slice %221 {offsets = [0, 0], sizes = [2, 32], strides = [1, 1]} : vector<4x128xf32> to vector<2x32xf32>
    %224 = vector.extract_strided_slice %221 {offsets = [0, 32], sizes = [2, 32], strides = [1, 1]} : vector<4x128xf32> to vector<2x32xf32>
    %225 = vector.extract_strided_slice %222 {offsets = [0, 64], sizes = [2, 32], strides = [1, 1]} : vector<4x128xf32> to vector<2x32xf32>
    %226 = vector.extract_strided_slice %221 {offsets = [0, 96], sizes = [2, 32], strides = [1, 1]} : vector<4x128xf32> to vector<2x32xf32>
    %227 = arith.mulf %224, %196 : vector<2x32xf32>
    %228 = arith.mulf %223, %225 : vector<2x32xf32>
    %229 = arith.addf %227, %228 : vector<2x32xf32>
    %230 = math.tanh %229 : vector<2x32xf32>
    %231 = arith.mulf %226, %230 : vector<2x32xf32>
    %232 = vector.extract_strided_slice %221 {offsets = [2, 0], sizes = [2, 32], strides = [1, 1]} : vector<4x128xf32> to vector<2x32xf32>
    %233 = vector.extract_strided_slice %221 {offsets = [2, 32], sizes = [2, 32], strides = [1, 1]} : vector<4x128xf32> to vector<2x32xf32>
    %234 = vector.extract_strided_slice %222 {offsets = [2, 64], sizes = [2, 32], strides = [1, 1]} : vector<4x128xf32> to vector<2x32xf32>
    %235 = vector.extract_strided_slice %221 {offsets = [2, 96], sizes = [2, 32], strides = [1, 1]} : vector<4x128xf32> to vector<2x32xf32>
    %236 = arith.mulf %233, %205 : vector<2x32xf32>
    %237 = arith.mulf %232, %234 : vector<2x32xf32>
    %238 = arith.addf %236, %237 : vector<2x32xf32>
    %239 = math.tanh %238 : vector<2x32xf32>
    %240 = arith.mulf %235, %239 : vector<2x32xf32>
    %241 = vector.extract_strided_slice %16 {offsets = [14, 0], sizes = [2, 128], strides = [1, 1]} : vector<16x128xf32> to vector<2x128xf32>
    %cst_42 = arith.constant dense<0.000000e+00> : vector<2x128xf32>
    %242 = tpu.matmul %231, %17, %cst_42 {dimension_numbers = #tpu.dot_dimension_numbers<[1], [0], [0], [1], [0, 0, 1, 1], [], []>} : vector<2x32xf32>, vector<32x128xf32>, vector<2x128xf32> -> vector<2x128xf32>
    %243 = arith.addf %241, %242 : vector<2x128xf32>
    %cst_43 = arith.constant dense<0.000000e+00> : vector<2x128xf32>
    %244 = tpu.matmul %231, %19, %cst_43 {dimension_numbers = #tpu.dot_dimension_numbers<[1], [0], [0], [1], [0, 0, 1, 1], [], []>} : vector<2x32xf32>, vector<32x128xf32>, vector<2x128xf32> -> vector<2x128xf32>
    %245 = vector.broadcast %20 : vector<1x128xf32> to vector<2x128xf32>
    %246 = arith.addf %244, %245 : vector<2x128xf32>
    %cst_44 = arith.constant dense<0.000000e+00> : vector<2x128xf32>
    %247 = tpu.matmul %240, %18, %cst_44 {dimension_numbers = #tpu.dot_dimension_numbers<[1], [0], [0], [1], [0, 0, 1, 1], [], []>} : vector<2x32xf32>, vector<32x128xf32>, vector<2x128xf32> -> vector<2x128xf32>
    %248 = arith.addf %246, %247 : vector<2x128xf32>
    %249 = tpu.concatenate %243, %248 in 0 : vector<2x128xf32>, vector<2x128xf32> -> vector<4x128xf32>
    %250 = arith.negf %249 : vector<4x128xf32>
    %251 = math.exp %250 : vector<4x128xf32>
    %cst_45 = arith.constant 1.000000e+00 : f32
    %252 = vector.broadcast %cst_45 : f32 to vector<4x128xf32>
    %253 = arith.addf %252, %251 : vector<4x128xf32>
    %254 = arith.divf %252, %253 : vector<4x128xf32>
    %255 = math.tanh %249 : vector<4x128xf32>
    %256 = vector.extract_strided_slice %254 {offsets = [0, 0], sizes = [2, 32], strides = [1, 1]} : vector<4x128xf32> to vector<2x32xf32>
    %257 = vector.extract_strided_slice %254 {offsets = [0, 32], sizes = [2, 32], strides = [1, 1]} : vector<4x128xf32> to vector<2x32xf32>
    %258 = vector.extract_strided_slice %255 {offsets = [0, 64], sizes = [2, 32], strides = [1, 1]} : vector<4x128xf32> to vector<2x32xf32>
    %259 = vector.extract_strided_slice %254 {offsets = [0, 96], sizes = [2, 32], strides = [1, 1]} : vector<4x128xf32> to vector<2x32xf32>
    %260 = arith.mulf %257, %229 : vector<2x32xf32>
    %261 = arith.mulf %256, %258 : vector<2x32xf32>
    %262 = arith.addf %260, %261 : vector<2x32xf32>
    %263 = math.tanh %262 : vector<2x32xf32>
    %264 = arith.mulf %259, %263 : vector<2x32xf32>
    %265 = vector.extract_strided_slice %254 {offsets = [2, 0], sizes = [2, 32], strides = [1, 1]} : vector<4x128xf32> to vector<2x32xf32>
    %266 = vector.extract_strided_slice %254 {offsets = [2, 32], sizes = [2, 32], strides = [1, 1]} : vector<4x128xf32> to vector<2x32xf32>
    %267 = vector.extract_strided_slice %255 {offsets = [2, 64], sizes = [2, 32], strides = [1, 1]} : vector<4x128xf32> to vector<2x32xf32>
    %268 = vector.extract_strided_slice %254 {offsets = [2, 96], sizes = [2, 32], strides = [1, 1]} : vector<4x128xf32> to vector<2x32xf32>
    %269 = arith.mulf %266, %238 : vector<2x32xf32>
    %270 = arith.mulf %265, %267 : vector<2x32xf32>
    %271 = arith.addf %269, %270 : vector<2x32xf32>
    %272 = math.tanh %271 : vector<2x32xf32>
    %273 = arith.mulf %268, %272 : vector<2x32xf32>
    %cst_46 = arith.constant dense<0.000000e+00> : vector<2x128xf32>
    %274 = tpu.matmul %264, %19, %cst_46 {dimension_numbers = #tpu.dot_dimension_numbers<[1], [0], [0], [1], [0, 0, 1, 1], [], []>} : vector<2x32xf32>, vector<32x128xf32>, vector<2x128xf32> -> vector<2x128xf32>
    %275 = vector.broadcast %20 : vector<1x128xf32> to vector<2x128xf32>
    %276 = arith.addf %274, %275 : vector<2x128xf32>
    %cst_47 = arith.constant dense<0.000000e+00> : vector<2x128xf32>
    %277 = tpu.matmul %273, %18, %cst_47 {dimension_numbers = #tpu.dot_dimension_numbers<[1], [0], [0], [1], [0, 0, 1, 1], [], []>} : vector<2x32xf32>, vector<32x128xf32>, vector<2x128xf32> -> vector<2x128xf32>
    %278 = arith.addf %276, %277 : vector<2x128xf32>
    %279 = arith.negf %278 : vector<2x128xf32>
    %280 = math.exp %279 : vector<2x128xf32>
    %cst_48 = arith.constant 1.000000e+00 : f32
    %281 = vector.broadcast %cst_48 : f32 to vector<2x128xf32>
    %282 = arith.addf %281, %280 : vector<2x128xf32>
    %283 = arith.divf %281, %282 : vector<2x128xf32>
    %284 = math.tanh %278 : vector<2x128xf32>
    %285 = vector.extract_strided_slice %283 {offsets = [0, 0], sizes = [2, 32], strides = [1, 1]} : vector<2x128xf32> to vector<2x32xf32>
    %286 = vector.extract_strided_slice %283 {offsets = [0, 32], sizes = [2, 32], strides = [1, 1]} : vector<2x128xf32> to vector<2x32xf32>
    %287 = vector.extract_strided_slice %284 {offsets = [0, 64], sizes = [2, 32], strides = [1, 1]} : vector<2x128xf32> to vector<2x32xf32>
    %288 = vector.extract_strided_slice %283 {offsets = [0, 96], sizes = [2, 32], strides = [1, 1]} : vector<2x128xf32> to vector<2x32xf32>
    %289 = arith.mulf %286, %271 : vector<2x32xf32>
    %290 = arith.mulf %285, %287 : vector<2x32xf32>
    %291 = arith.addf %289, %290 : vector<2x32xf32>
    %292 = math.tanh %291 : vector<2x32xf32>
    %293 = arith.mulf %288, %292 : vector<2x32xf32>
    %c0_49 = arith.constant 0 : index
    %c0_50 = arith.constant 0 : index
    %294 = vector.load %arg4[%c0_49, %c0_50] : memref<33x128xf32, #tpu.memory_space<vmem>>, vector<32x128xf32>
    %cst_51 = arith.constant dense<0.000000e+00> : vector<2x128xf32>
    %295 = tpu.matmul %293, %294, %cst_51 {dimension_numbers = #tpu.dot_dimension_numbers<[1], [0], [0], [1], [0, 0, 1, 1], [], []>} : vector<2x32xf32>, vector<32x128xf32>, vector<2x128xf32> -> vector<2x128xf32>
    %c32_52 = arith.constant 32 : index
    %c0_53 = arith.constant 0 : index
    %296 = vector.load %arg4[%c32_52, %c0_53] : memref<33x128xf32, #tpu.memory_space<vmem>>, vector<1x128xf32>
    %297 = vector.broadcast %296 : vector<1x128xf32> to vector<2x128xf32>
    %298 = arith.addf %295, %297 : vector<2x128xf32>
    %c0_54 = arith.constant 0 : index
    %c0_55 = arith.constant 0 : index
    %299 = vector.load %arg5[%c0_54, %c0_55] : memref<2x128xf32, #tpu.memory_space<vmem>>, vector<2x128xf32>
    tpu.vector_store %arg5[%c0_54, %c0_55], %298 {strides = array<i32>} : memref<2x128xf32, #tpu.memory_space<vmem>>, vector<2x128xf32>,
    return
  }
}

</mosaic_0001>

<bundles_post_ra>
// kernel: tpu_custom_call.1
= control target key start
LH: loop header
LB: loop body
LE: loop exit
PB: predicated region body
PF: predicated region fallthrough
CT: control target
= control target key end

     0   :  { %10 = vsyncpa [#allocation3], 0  ;;  %s1830_s0 = inlined_call_operand.vmem [shape: s32[16,2], index: 0, kind: input, shape index: {}]   ;;  %s1831_s1 = inlined_call_operand.hbm [shape: f32[37,128], index: 1, kind: input, shape index: {}]   ;;  %s1832_s2 = inlined_call_operand.hbm [shape: f32[96,128], index: 2, kind: input, shape index: {}]   ;;  %s1833_s3 = inlined_call_operand.vmem [shape: f32[2,128], index: 3, kind: input, shape index: {}]   ;;  %s1834_s4 = inlined_call_operand.hbm [shape: f32[33,128], index: 4, kind: input, shape index: {}]   ;;  %s1835_s5 = inlined_call_operand.hbm [shape: f32[2,128], index: 5, kind: output, shape index: {}]  }
   0x1   :  { %11 = vsyncpa [#allocation6], 0 }
   0x2   :  { %12 = vsyncpa [#allocation4], 0  ;;  %s32_s20 = sshll.u32 %s1832_s2, 4  ;;  %s1486_s21 = smov [#allocation5]   ;;  %s33_s20 = int_to_ptr.hbm [resolvable:$true] %s32_s20 }
   0x3   :  { %s34_s22 = sshll.u32 %s1486_s21, 4  ;;  %s19_s25 = sshll.u32 %s1831_s1, 4  ;;  %s35_s22 = int_to_ptr.vmem [resolvable:$true] %s34_s22  ;;  %s20_s25 = int_to_ptr.hbm [resolvable:$true] %s19_s25 }
   0x4   :  { %s1487_s26 = smov 128   ;;  %s1488_s27 = smov 8  }
   0x5   :  { %40 = dma.hbm_to_vmem [thread:$0]  %s33_s20, 1536, %s35_s22, [#allocation6], %s1487_s26, %s1487_s26, %s1488_s27  }
   0x6   :  { %s1489_s28 = smov [#allocation2]   ;;  %s47_s7 = sshll.u32 %s1834_s4, 4  ;;  %s48_s7 = int_to_ptr.hbm [resolvable:$true] %s47_s7 }
   0x7   :  { %s21_s29 = sshll.u32 %s1489_s28, 4  ;;  %s1490_s2 = smov [#allocation7]   ;;  %s22_s29 = int_to_ptr.vmem [resolvable:$true] %s21_s29 }
   0x8   :  { %27 = dma.hbm_to_vmem [thread:$0]  %s20_s25, 640, %s22_s29, [#allocation3], %s1487_s26, %s1487_s26, %s1488_s27  }
   0x9   :  { %s49_s8 = sshll.u32 %s1490_s2, 4  ;;  %s50_s8 = int_to_ptr.vmem [resolvable:$true] %s49_s8 }
   0xa   :  { %55 = dma.hbm_to_vmem [thread:$0]  %s48_s7, 640, %s50_s8, [#allocation6], %s1487_s26, %s1487_s26, %s1488_s27  }
   0xb   :  { %1480 = dma.done.wait [#allocation3], 640  }
   0xc   :  { %1481 = vsyncadd [#allocation3], 4294966656 }
   0xd   :  { %1482 = dma.done.wait [#allocation6], 2176  }
   0xe   :  { %1483 = vsyncadd [#allocation6], 4294965120  ;;  %v1491_v0 = vmov 0   ;;  %v70_v1 = vld [vmem:[%s1830_s0] sm:$0xff]  ;;  %v1492_v2 = vmov 1   ;;  %vm112_vm0 = vcmask 1044480   ;;  %v68_v13 = vlaneseq }
   0xf   :  { %1292 = vset.pattern.permute.xlu0 %v1491_v0  ;;  %1294 = vset.pattern.permute.xlu2 %v1491_v0  ;;  %v102_v3 = vld [vmem:[#allocation2 + $0x20] sm:$0x1f]  ;;  %v101_v4 = vld [vmem:[#allocation2 + $0x18] sm:$0xff]  ;;  %v100_v6 = vld [vmem:[#allocation2 + $0x10] sm:$0xff]  ;;  %v1493_v12 = vmov 0.0   ;;  %vm105_vm3 = vcmask 302080  }
  0x10   :  { %73 = vperm.xlu0 %1292, %v70_v1   ;;  %1246 = vmatpush.msk.msra.mxu0 %vm112_vm0, %v102_v3  ;;  %v1539_v5 = vld [vmem:[#allocation5 + $0x18] sm:$0xff]  ;;  %v99_v7 = vld [vmem:[#allocation2 + $0x8] sm:$0xff]  ;;  %v1543_v8 = vld [vmem:[#allocation5 + $0x10] sm:$0xff]  ;;  %v1560_v15 = vand.u32 127, %v68_v13  ;;  %s1494_s11 = smov 64   ;;  %s1495_s12 = smov 32  }
  0x11   :  { %168 = vmatpush.msra.mxu1 %v1539_v5  ;;  %231 = vmatpush.msra.mxu2 %v1539_v5  ;;  %v98_v9 = vld [vmem:[#allocation2] sm:$0xff]  ;;  %v1546_v10 = vld [vmem:[#allocation5 + $0x8] sm:$0xff]  ;;  %v1550_v11 = vld [vmem:[#allocation5] sm:$0xff]  ;;  %vm152_vm8 = vcmask 261120   ;;  %vm291_vm9 = vcmask 1041408   ;;  %s1231_s19 = sshll.u32 %s1835_s5, 4  ;;  %s1232_s19 = int_to_ptr.hbm [resolvable:$true] %s1231_s19 }
  0x12   :  { %128 = vmatpush.msra.mxu0 %v101_v4  ;;  %v1570_v20 = vld [vmem:[%s1833_s3] ss:$0 sm:$0xff]  ;;  %v1584_v46 = vld [vmem:[#allocation5 + $0x50] sm:$0xff]  ;;  %v1587_v47 = vld [vmem:[#allocation5 + $0x48] sm:$0xff] }
  0x13   :  { %169 = vmatpush.msra.mxu1 %v1543_v8  ;;  %232 = vmatpush.msra.mxu2 %v1543_v8  ;;  %v1582_v45 = vld [vmem:[#allocation5 + $0x58] sm:$0xff]  ;;  %v1590_v48 = vld [vmem:[#allocation5 + $0x40] sm:$0xff]  ;;  %v1601_v52 = vld [vmem:[#allocation5 + $0x30] sm:$0xff] }
  0x14   :  { %129 = vmatpush.msra.mxu0 %v100_v6  ;;  %256 = vmatpush.msra.mxu3 %v1582_v45  ;;  %v1599_v51 = vld [vmem:[#allocation5 + $0x38] sm:$0xff]  ;;  %v1605_v53 = vld [vmem:[#allocation5 + $0x28] sm:$0xff]  ;;  %v1609_v54 = vld [vmem:[#allocation5 + $0x20] sm:$0xff] }
  0x15   :  { %170 = vmatpush.msra.mxu1 %v1546_v10  ;;  %233 = vmatpush.msra.mxu2 %v1546_v10  ;;  %v1641_v56 = vld [vmem:[%s1833_s3 + $0x1] ss:$0 sm:$0xff] }
  0x16   :  { %130 = vmatpush.msra.mxu0 %v99_v7  ;;  %257 = vmatpush.msra.mxu3 %v1584_v46 }
  0x17   :  { %171 = vmatpush.msra.mxu1 %v1550_v11  ;;  %234 = vmatpush.msra.mxu2 %v1550_v11 }
  0x18   :  { %1293 = vset.pattern.permute.xlu0 %v1492_v2  ;;  %131 = vmatpush.msra.mxu0 %v98_v9 }
  0x19   :  { %85 = vperm.xlu0 %1293, %v70_v1   ;;  %172 = vmatmul.f32.vlgmr.msra.gmra.mxu1 %v1493_v12 }
  0x1a   :  { %355 = vmatpush.msrb.mxu2 %v1539_v5  ;;  %258 = vmatpush.msra.mxu3 %v1587_v47 }
  0x1b   :  { %276 = vmatpush.msrb.mxu1 %v1599_v51  ;;  %533 = vmatpush.msrb.mxu0 %v1599_v51 }
  0x1c   :  { %356 = vmatpush.msrb.mxu2 %v1543_v8  ;;  %259 = vmatpush.msra.mxu3 %v1590_v48 }
  0x1d   :  { %277 = vmatpush.msrb.mxu1 %v1601_v52  ;;  %534 = vmatpush.msrb.mxu0 %v1601_v52 }
  0x1e   :  { %357 = vmatpush.msrb.mxu2 %v1546_v10  ;;  %379 = vmatpush.msrb.mxu3 %v1582_v45 }
  0x1f   :  { %278 = vmatpush.msrb.mxu1 %v1605_v53  ;;  %535 = vmatpush.msrb.mxu0 %v1605_v53 }
  0x20   :  { %358 = vmatpush.msrb.mxu2 %v1550_v11  ;;  %380 = vmatpush.msrb.mxu3 %v1584_v46 }
  0x21   :  { %279 = vmatpush.msrb.mxu1 %v1609_v54  ;;  %536 = vmatpush.msrb.mxu0 %v1609_v54 }
  0x22   :  { %381 = vmatpush.msrb.mxu3 %v1587_v47  ;;  %280 = vmatmul.f32.vlgmr.msrb.gmra.mxu1 %v1493_v12 }
  0x23   :  { %405 = vmatpush.msra.mxu1 %v1599_v51 }
  0x24   :  { %382 = vmatpush.msrb.mxu3 %v1590_v48 }
  0x25   :  { %406 = vmatpush.msra.mxu1 %v1601_v52 }
  0x27   :  { %407 = vmatpush.msra.mxu1 %v1605_v53 }
  0x29   :  { %408 = vmatpush.msra.mxu1 %v1609_v54 }
  0x2b   :  { %611 = vmatpush.msrb.mxu1 %v1539_v5 }
  0x2d   :  { %612 = vmatpush.msrb.mxu1 %v1543_v8 }
  0x2f   :  { %613 = vmatpush.msrb.mxu1 %v1546_v10 }
  0x31   :  { %614 = vmatpush.msrb.mxu1 %v1550_v11 }
  0x82   :  { %v74_v14 = vpop.permute.xlu0 %73 }
  0x83   :  { %vm78_vm1 = vcmp.eq.s32.totalorder %v74_v14, %v1560_v15 }
  0x84   :  { %v1242_v17 = vsel %vm78_vm1, 1.0, %v1493_v12 }
  0x8b   :  { %v86_v16 = vpop.permute.xlu0 %85 }
  0x8c   :  { %vm90_vm2 = vcmp.eq.s32.totalorder %v86_v16, %v1560_v15 }
  0x8d   :  { %v1244_v18 = vsel %vm90_vm2, 1.0, %v1493_v12 }
  0x8e   :  { %v96_v19 = vadd.f32 %v1244_v18, %v1242_v17 }
  0x90   :  { %1247 = vmatmul.msk.f32.vlgmr.msra.gmra.mxu0 %vm105_vm3, %v96_v19 }
  0x91   :  { %733 = vmatpush.msra.mxu0 %v1539_v5 }
  0x93   :  { %734 = vmatpush.msra.mxu0 %v1543_v8 }
  0x95   :  { %735 = vmatpush.msra.mxu0 %v1546_v10 }
  0x96   :  { %v173_v22 = vpop.f32.mrf.mxu1 }
  0x97   :  { %736 = vmatpush.msra.mxu0 %v1550_v11 }
  0x9f   :  { %v281_v57 = vpop.f32.mrf.mxu1 }
 0x10d   :  { %v133_v21 = vpop.f32.mrf.mxu0 }
 0x10e   :  { %v1573_v23 = vadd.f32 %v1570_v20, %v133_v21 }
 0x110   :  { %v176_v24 = vadd.f32 %v173_v22, %v1573_v23 }
 0x112   :  { %1298 = vtanh.f32 %v176_v24  ;;  %v1249_v26 = vmul.f32 -1.442695, %v176_v24 }
 0x114   :  { %1300 = vpow2.f32 %v1249_v26 }
 0x118   :  { %v1299_v25 = vpop.eup %1298 }
 0x119   :  { %199 = vrot.lane.b32.xlu1 %v1299_v25, %s1494_s11 }
 0x11a   :  { %v1301_v27 = vpop.eup %1300 }
 0x11b   :  { %v180_v28 = vadd.f32 1.0, %v1301_v27 }
 0x11d   :  { %1302 = vrcp.f32 %v180_v28  ;;  %v192_v34 = vand.u32 2147483648, %v180_v28  ;;  %vm186_vm5 = vweird.f32 %v180_v28  ;;  %v190_v35 = vand.u32 2147483647, %v180_v28 }
 0x11f   :  { %v193_v37 = vor.u32 1.1754944e-38, %v192_v34  ;;  %vm191_vm7 = vcmp.eq.f32.partialorder %v190_v35, 8.507059e+37 }
 0x123   :  { %v1303_v29 = vpop.eup %1302 }
 0x124   :  { %v182_v30 = vmul.f32 %v1303_v29, %v180_v28  ;;  %vm187_vm4 = vweird.f32 %v1303_v29 }
 0x125   :  { %vm188_vm6 = vmor %vm186_vm5, %vm187_vm4 }
 0x126   :  { %v183_v31 = vsub.f32 1.0, %v182_v30 }
 0x128   :  { %v184_v32 = vmul.f32 %v1303_v29, %v183_v31 }
 0x12a   :  { %v185_v33 = vadd.f32 %v1303_v29, %v184_v32 }
 0x12c   :  { %v189_v36 = vsel %vm188_vm6, %v1303_v29, %v185_v33 }
 0x12d   :  { %v194_v39 = vsel %vm191_vm7, %v193_v37, %v189_v36 }
 0x12e   :  { %v197_v41 = vmul.f32 0.0, %v194_v39 }
 0x18b   :  { %v200_v38 = vpop.permute.xlu1 %199 }
 0x18c   :  { %v202_v40 = vmul.f32 %v200_v38, %v194_v39 }
 0x18e   :  { %204 = vrot.lane.b32.xlu1 %v202_v40, %s1495_s12 }
 0x200   :  { %v205_v42 = vpop.permute.xlu1 %204 }
 0x201   :  { %v1578_v43 = vadd.f32 %v205_v42, %v197_v41 }
 0x203   :  { %1304 = vtanh.f32 %v1578_v43 }
 0x209   :  { %v1305_v44 = vpop.eup %1304 }
 0x20a   :  { %210 = vrot.lane.b32.xlu2 %v1305_v44, %s1494_s11 }
 0x264   :  { %v211_v49 = vpop.permute.xlu2 %210 }
 0x265   :  { %v213_v50 = vmul.f32 %v211_v49, %v194_v39 }
 0x267   :  { %215 = vrot.lane.b32.xlu2 %v213_v50, %s1495_s12 }
 0x2c1   :  { %v216_v55 = vpop.permute.xlu2 %215 }
 0x2c2   :  { %1250 = vmatmul.msk.f32.vlgmr.msra.gmra.mxu2 %vm152_vm8, %v216_v55  ;;  %1251 = vmatmul.msk.f32.vlgmr.msra.gmra.mxu3 %vm152_vm8, %v216_v55 }
 0x2c3   :  { %483 = vmatpush.msra.mxu2 %v1539_v5  ;;  %507 = vmatpush.msra.mxu3 %v1582_v45 }
 0x2c5   :  { %484 = vmatpush.msra.mxu2 %v1543_v8  ;;  %508 = vmatpush.msra.mxu3 %v1584_v46 }
 0x2c7   :  { %485 = vmatpush.msra.mxu2 %v1546_v10  ;;  %509 = vmatpush.msra.mxu3 %v1587_v47 }
 0x2c9   :  { %486 = vmatpush.msra.mxu2 %v1550_v11  ;;  %510 = vmatpush.msra.mxu3 %v1590_v48 }
 0x345   :  { %v236_v58 = vpop.f32.mrf.mxu2  ;;  %v261_v59 = vpop.f32.mrf.mxu3 }
 0x346   :  { %v240_v60 = vrot.slane %v236_v58, 6  ;;  %v262_v61 = vadd.f32 %v1641_v56, %v261_v59 }
 0x348   :  { %v242_v62 = vadd.f32 %v240_v60, %v1573_v23  ;;  %v284_v63 = vadd.f32 %v281_v57, %v262_v61 }
 0x34a   :  { %v286_v0 = vrot.slane %v242_v62, 2  ;;  %v289_v1 = vrot.slane %v284_v63, 6 }
 0x34c   :  { %v292_v2 = vsel %vm291_vm9, %v286_v0, %v289_v1 }
 0x34d   :  { %1306 = vtanh.f32 %v292_v2  ;;  %v1252_v4 = vmul.f32 -1.442695, %v292_v2 }
 0x34f   :  { %1308 = vpow2.f32 %v1252_v4 }
 0x353   :  { %v1307_v3 = vpop.eup %1306 }
 0x354   :  { %315 = vrot.lane.b32.xlu1 %v1307_v3, %s1494_s11 }
 0x355   :  { %v1309_v6 = vpop.eup %1308 }
 0x356   :  { %v296_v7 = vadd.f32 1.0, %v1309_v6 }
 0x358   :  { %1310 = vrcp.f32 %v296_v7  ;;  %v308_v18 = vand.u32 2147483648, %v296_v7  ;;  %vm302_vm11 = vweird.f32 %v296_v7  ;;  %v306_v19 = vand.u32 2147483647, %v296_v7 }
 0x35a   :  { %v309_v22 = vor.u32 1.1754944e-38, %v308_v18  ;;  %vm307_vm13 = vcmp.eq.f32.partialorder %v306_v19, 8.507059e+37  ;;  %v71_v18 = vld [vmem:[%s1830_s0 + $0x8] sm:$0xff]  ;;  %s1496_s0 = smov [#allocation8]  }
 0x35b   :  { %s1229_s16 = sshll.u32 %s1496_s0, 4  ;;  %s1230_s16 = int_to_ptr.vmem [resolvable:$true] %s1229_s16 }
 0x35e   :  { %v1311_v9 = vpop.eup %1310 }
 0x35f   :  { %v298_v13 = vmul.f32 %v1311_v9, %v296_v7  ;;  %vm303_vm10 = vweird.f32 %v1311_v9 }
 0x360   :  { %vm304_vm12 = vmor %vm302_vm11, %vm303_vm10 }
 0x361   :  { %v299_v14 = vsub.f32 1.0, %v298_v13 }
 0x363   :  { %v300_v16 = vmul.f32 %v1311_v9, %v299_v14 }
 0x365   :  { %v301_v17 = vadd.f32 %v1311_v9, %v300_v16 }
 0x367   :  { %v305_v21 = vsel %vm304_vm12, %v1311_v9, %v301_v17 }
 0x368   :  { %v310_v25 = vsel %vm307_vm13, %v309_v22, %v305_v21 }
 0x369   :  { %v330_v27 = vmul.f32 0.0, %v310_v25  ;;  %v313_v28 = vmul.f32 %v310_v25, %v1578_v43 }
 0x3c6   :  { %v316_v24 = vpop.permute.xlu1 %315 }
 0x3c7   :  { %v318_v26 = vmul.f32 %v316_v24, %v310_v25 }
 0x3c9   :  { %320 = vrot.lane.b32.xlu2 %v318_v26, %s1495_s12 }
 0x423   :  { %v321_v29 = vpop.permute.xlu2 %320 }
 0x424   :  { %v1649_v30 = vadd.f32 %v321_v29, %v313_v28  ;;  %v1651_v31 = vadd.f32 %v330_v27, %v321_v29 }
 0x426   :  { %1312 = vtanh.f32 %v1649_v30 }
 0x427   :  { %1314 = vtanh.f32 %v1651_v31 }
 0x42c   :  { %v1313_v32 = vpop.eup %1312 }
 0x42d   :  { %v1315_v33 = vpop.eup %1314  ;;  %326 = vrot.lane.b32.xlu0 %v1313_v32, %s1494_s11 }
 0x42e   :  { %334 = vrot.lane.b32.xlu1 %v1315_v33, %s1494_s11 }
 0x49f   :  { %v327_v34 = vpop.permute.xlu0 %326 }
 0x4a0   :  { %v335_v35 = vpop.permute.xlu1 %334  ;;  %v329_v36 = vmul.f32 %v327_v34, %v310_v25 }
 0x4a1   :  { %v337_v37 = vmul.f32 %v335_v35, %v310_v25 }
 0x4a2   :  { %339 = vrot.lane.b32.xlu2 %v329_v36, %s1495_s12 }
 0x4a3   :  { %v388_v38 = vrot.slane %v337_v37, 2 }
 0x4a5   :  { %389 = vrot.lane.b32.xlu0 %v388_v38, %s1495_s12 }
 0x4fc   :  { %v340_v39 = vpop.permute.xlu2 %339 }
 0x4fd   :  { %1253 = vmatmul.msk.f32.vlgmr.msrb.gmra.mxu2 %vm152_vm8, %v340_v39  ;;  %1254 = vmatmul.msk.f32.vlgmr.msrb.gmra.mxu3 %vm152_vm8, %v340_v39 }
 0x4fe   :  { %632 = vmatpush.msrb.mxu2 %v1582_v45  ;;  %658 = vmatpush.msrb.mxu3 %v1599_v51 }
 0x500   :  { %633 = vmatpush.msrb.mxu2 %v1584_v46  ;;  %659 = vmatpush.msrb.mxu3 %v1601_v52 }
 0x502   :  { %634 = vmatpush.msrb.mxu2 %v1587_v47  ;;  %660 = vmatpush.msrb.mxu3 %v1605_v53 }
 0x504   :  { %635 = vmatpush.msrb.mxu2 %v1590_v48  ;;  %661 = vmatpush.msrb.mxu3 %v1609_v54 }
 0x517   :  { %v390_v40 = vpop.permute.xlu0 %389 }
 0x518   :  { %1255 = vmatmul.msk.f32.vlgmr.msra.gmra.mxu1 %vm152_vm8, %v390_v40 }
 0x519   :  { %757 = vmatpush.msra.mxu1 %v1582_v45 }
 0x51b   :  { %758 = vmatpush.msra.mxu1 %v1584_v46 }
 0x51d   :  { %759 = vmatpush.msra.mxu1 %v1587_v47 }
 0x51f   :  { %760 = vmatpush.msra.mxu1 %v1590_v48 }
 0x580   :  { %v360_v41 = vpop.f32.mrf.mxu2  ;;  %v384_v43 = vpop.f32.mrf.mxu3 }
 0x581   :  { %v364_v42 = vrot.slane %v360_v41, 4  ;;  %v385_v49 = vadd.f32 %v1641_v56, %v384_v43 }
 0x583   :  { %v366_v44 = vadd.f32 %v364_v42, %v1573_v23 }
 0x585   :  { %v415_v57 = vrot.slane %v366_v44, 4 }
 0x595   :  { %v410_v50 = vpop.f32.mrf.mxu1 }
 0x596   :  { %v413_v55 = vadd.f32 %v410_v50, %v385_v49 }
 0x598   :  { %v418_v58 = vrot.slane %v413_v55, 6 }
 0x59a   :  { %v420_v59 = vsel %vm291_vm9, %v415_v57, %v418_v58 }
 0x59b   :  { %1316 = vtanh.f32 %v420_v59  ;;  %v1256_v61 = vmul.f32 -1.442695, %v420_v59 }
 0x59d   :  { %1318 = vpow2.f32 %v1256_v61 }
 0x5a1   :  { %v1317_v60 = vpop.eup %1316 }
 0x5a2   :  { %443 = vrot.lane.b32.xlu1 %v1317_v60, %s1494_s11 }
 0x5a3   :  { %v1319_v62 = vpop.eup %1318 }
 0x5a4   :  { %v424_v63 = vadd.f32 1.0, %v1319_v62 }
 0x5a6   :  { %1320 = vrcp.f32 %v424_v63  ;;  %v436_v6 = vand.u32 2147483648, %v424_v63  ;;  %vm430_vm15 = vweird.f32 %v424_v63  ;;  %v434_v7 = vand.u32 2147483647, %v424_v63 }
 0x5a8   :  { %v437_v13 = vor.u32 1.1754944e-38, %v436_v6  ;;  %vm435_vm1 = vcmp.eq.f32.partialorder %v434_v7, 8.507059e+37 }
 0x5ac   :  { %v1321_v0 = vpop.eup %1320 }
 0x5ad   :  { %v426_v1 = vmul.f32 %v1321_v0, %v424_v63  ;;  %vm431_vm14 = vweird.f32 %v1321_v0 }
 0x5ae   :  { %vm432_vm0 = vmor %vm430_vm15, %vm431_vm14 }
 0x5af   :  { %v427_v2 = vsub.f32 1.0, %v426_v1 }
 0x5b1   :  { %v428_v3 = vmul.f32 %v1321_v0, %v427_v2 }
 0x5b3   :  { %v429_v4 = vadd.f32 %v1321_v0, %v428_v3 }
 0x5b5   :  { %v433_v9 = vsel %vm432_vm0, %v1321_v0, %v429_v4 }
 0x5b6   :  { %v438_v16 = vsel %vm435_vm1, %v437_v13, %v433_v9 }
 0x5b7   :  { %v458_v19 = vmul.f32 %v438_v16, %v1651_v31  ;;  %v441_v21 = vmul.f32 %v438_v16, %v1649_v30 }
 0x614   :  { %v444_v14 = vpop.permute.xlu1 %443 }
 0x615   :  { %v446_v17 = vmul.f32 %v444_v14, %v438_v16 }
 0x617   :  { %448 = vrot.lane.b32.xlu2 %v446_v17, %s1495_s12 }
 0x61f   :  { %76 = vperm.xlu2 %1294, %v71_v18  }
 0x671   :  { %v449_v22 = vpop.permute.xlu2 %448 }
 0x672   :  { %v1684_v24 = vadd.f32 %v449_v22, %v441_v21  ;;  %v1686_v25 = vadd.f32 %v458_v19, %v449_v22 }
 0x674   :  { %1322 = vtanh.f32 %v1684_v24 }
 0x675   :  { %1324 = vtanh.f32 %v1686_v25 }
 0x679   :  { %v77_v32 = vpop.permute.xlu2 %76 }
 0x67a   :  { %v1323_v26 = vpop.eup %1322  ;;  %vm79_vm2 = vcmp.eq.s32.totalorder %v77_v32, %v1560_v15 }
 0x67b   :  { %v1325_v27 = vpop.eup %1324  ;;  %454 = vrot.lane.b32.xlu0 %v1323_v26, %s1494_s11  ;;  %v1243_v34 = vsel %vm79_vm2, 1.0, %v1493_v12 }
 0x67c   :  { %462 = vrot.lane.b32.xlu1 %v1325_v27, %s1494_s11 }
 0x683   :  { %88 = vperm.xlu0 %1293, %v71_v18  }
 0x6ed   :  { %v455_v28 = vpop.permute.xlu0 %454 }
 0x6ee   :  { %v463_v29 = vpop.permute.xlu1 %462  ;;  %v457_v31 = vmul.f32 %v455_v28, %v438_v16 }
 0x6ef   :  { %v465_v30 = vmul.f32 %v463_v29, %v438_v16 }
 0x6f0   :  { %467 = vrot.lane.b32.xlu1 %v457_v31, %s1495_s12 }
 0x6f1   :  { %v516_v33 = vrot.slane %v465_v30, 2 }
 0x6f3   :  { %517 = vrot.lane.b32.xlu2 %v516_v33, %s1495_s12 }
 0x6f5   :  { %v89_v35 = vpop.permute.xlu0 %88 }
 0x6f6   :  { %vm91_vm4 = vcmp.eq.s32.totalorder %v89_v35, %v1560_v15 }
 0x6f7   :  { %v1245_v36 = vsel %vm91_vm4, 1.0, %v1493_v12 }
 0x6f8   :  { %v97_v37 = vadd.f32 %v1245_v36, %v1243_v34 }
 0x6fa   :  { %1248 = vmatmul.msk.f32.gmra.mxu0 %vm105_vm3, %v97_v37 }
 0x74d   :  { %v518_v38 = vpop.permute.xlu2 %517 }
 0x74e   :  { %1259 = vmatmul.msk.f32.vlgmr.msrb.gmra.mxu0 %vm152_vm8, %v518_v38 }
 0x74f   :  { %885 = vmatpush.msrb.mxu0 %v1582_v45 }
 0x751   :  { %886 = vmatpush.msrb.mxu0 %v1584_v46 }
 0x753   :  { %887 = vmatpush.msrb.mxu0 %v1587_v47 }
 0x755   :  { %888 = vmatpush.msrb.mxu0 %v1590_v48 }
 0x762   :  { %v468_v39 = vpop.permute.xlu1 %467 }
 0x763   :  { %1257 = vmatmul.msk.f32.vlgmr.msra.gmra.mxu2 %vm152_vm8, %v468_v39  ;;  %1258 = vmatmul.msk.f32.vlgmr.msra.gmra.mxu3 %vm152_vm8, %v468_v39 }
 0x764   :  { %783 = vmatpush.msra.mxu2 %v1599_v51  ;;  %861 = vmatpush.msra.mxu3 %v1539_v5 }
 0x766   :  { %784 = vmatpush.msra.mxu2 %v1601_v52  ;;  %862 = vmatpush.msra.mxu3 %v1543_v8 }
 0x768   :  { %785 = vmatpush.msra.mxu2 %v1605_v53  ;;  %863 = vmatpush.msra.mxu3 %v1546_v10 }
 0x76a   :  { %786 = vmatpush.msra.mxu2 %v1609_v54  ;;  %864 = vmatpush.msra.mxu3 %v1550_v11 }
 0x777   :  { %v1714_v12 = vpop.f32.mrf.mxu0 }
 0x7cb   :  { %v538_v43 = vpop.f32.mrf.mxu0 }
 0x7e6   :  { %v488_v15 = vpop.f32.mrf.mxu2  ;;  %v512_v40 = vpop.f32.mrf.mxu3 }
 0x7e7   :  { %v492_v41 = vrot.slane %v488_v15, 2  ;;  %v513_v42 = vadd.f32 %v1641_v56, %v512_v40 }
 0x7e9   :  { %v494_v44 = vadd.f32 %v492_v41, %v1573_v23  ;;  %v541_v49 = vadd.f32 %v538_v43, %v513_v42 }
 0x7eb   :  { %v543_v50 = vrot.slane %v494_v44, 6  ;;  %v546_v55 = vrot.slane %v541_v49, 6 }
 0x7ed   :  { %v548_v57 = vsel %vm291_vm9, %v543_v50, %v546_v55 }
 0x7ee   :  { %1326 = vtanh.f32 %v548_v57  ;;  %v1260_v59 = vmul.f32 -1.442695, %v548_v57 }
 0x7f0   :  { %1328 = vpow2.f32 %v1260_v59 }
 0x7f4   :  { %v1327_v58 = vpop.eup %1326 }
 0x7f5   :  { %571 = vrot.lane.b32.xlu0 %v1327_v58, %s1494_s11 }
 0x7f6   :  { %v1329_v60 = vpop.eup %1328 }
 0x7f7   :  { %v552_v61 = vadd.f32 1.0, %v1329_v60 }
 0x7f9   :  { %1330 = vrcp.f32 %v552_v61  ;;  %v564_v23 = vand.u32 2147483648, %v552_v61  ;;  %vm558_vm5 = vweird.f32 %v552_v61  ;;  %v562_v3 = vand.u32 2147483647, %v552_v61 }
 0x7fb   :  { %v565_v6 = vor.u32 1.1754944e-38, %v564_v23  ;;  %vm563_vm7 = vcmp.eq.f32.partialorder %v562_v3, 8.507059e+37 }
 0x7ff   :  { %v1331_v62 = vpop.eup %1330 }
 0x800   :  { %v554_v63 = vmul.f32 %v1331_v62, %v552_v61  ;;  %vm559_vm3 = vweird.f32 %v1331_v62 }
 0x801   :  { %vm560_vm6 = vmor %vm558_vm5, %vm559_vm3 }
 0x802   :  { %v555_v0 = vsub.f32 1.0, %v554_v63 }
 0x804   :  { %v556_v1 = vmul.f32 %v1331_v62, %v555_v0 }
 0x806   :  { %v557_v2 = vadd.f32 %v1331_v62, %v556_v1 }
 0x808   :  { %v561_v4 = vsel %vm560_vm6, %v1331_v62, %v557_v2 }
 0x809   :  { %v566_v9 = vsel %vm563_vm7, %v565_v6, %v561_v4 }
 0x80a   :  { %v586_v14 = vmul.f32 %v566_v9, %v1686_v25  ;;  %v569_v16 = vmul.f32 %v566_v9, %v1684_v24 }
 0x867   :  { %v572_v7 = vpop.permute.xlu0 %571 }
 0x868   :  { %v574_v13 = vmul.f32 %v572_v7, %v566_v9 }
 0x86a   :  { %576 = vrot.lane.b32.xlu1 %v574_v13, %s1495_s12 }
 0x8dc   :  { %v577_v17 = vpop.permute.xlu1 %576 }
 0x8dd   :  { %v1723_v18 = vadd.f32 %v577_v17, %v569_v16  ;;  %v1725_v19 = vadd.f32 %v586_v14, %v577_v17 }
 0x8df   :  { %1332 = vtanh.f32 %v1723_v18 }
 0x8e0   :  { %1334 = vtanh.f32 %v1725_v19 }
 0x8e5   :  { %v1333_v21 = vpop.eup %1332 }
 0x8e6   :  { %v1335_v22 = vpop.eup %1334  ;;  %582 = vrot.lane.b32.xlu2 %v1333_v21, %s1494_s11 }
 0x8e7   :  { %590 = vrot.lane.b32.xlu0 %v1335_v22, %s1494_s11 }
 0x940   :  { %v583_v26 = vpop.permute.xlu2 %582 }
 0x941   :  { %v585_v27 = vmul.f32 %v583_v26, %v566_v9 }
 0x943   :  { %595 = vrot.lane.b32.xlu1 %v585_v27, %s1495_s12 }
 0x959   :  { %v591_v24 = vpop.permute.xlu0 %590 }
 0x95a   :  { %v593_v25 = vmul.f32 %v591_v24, %v566_v9 }
 0x95c   :  { %v641_v28 = vrot.slane %v593_v25, 2 }
 0x95e   :  { %642 = vrot.lane.b32.xlu2 %v641_v28, %s1495_s12 }
 0x9b5   :  { %v596_v29 = vpop.permute.xlu1 %595 }
 0x9b6   :  { %1261 = vmatmul.msk.f32.vlgmr.msrb.gmra.mxu1 %vm152_vm8, %v596_v29  ;;  %1262 = vmatmul.msk.f32.vlgmr.msrb.gmra.mxu2 %vm152_vm8, %v596_v29 }
 0x9b7   :  { %911 = vmatpush.msrb.mxu1 %v1599_v51  ;;  %989 = vmatpush.msrb.mxu2 %v1539_v5 }
 0x9b8   :  { %v643_v31 = vpop.permute.xlu2 %642 }
 0x9b9   :  { %1263 = vmatmul.msk.f32.vlgmr.msrb.gmra.mxu3 %vm152_vm8, %v643_v31  ;;  %912 = vmatpush.msrb.mxu1 %v1601_v52 }
 0x9ba   :  { %1013 = vmatpush.msrb.mxu3 %v1582_v45  ;;  %990 = vmatpush.msrb.mxu2 %v1543_v8  ;;  %v1751_v8 = vadd.f32 %v1570_v20, %v1714_v12 }
 0x9bb   :  { %913 = vmatpush.msrb.mxu1 %v1605_v53 }
 0x9bc   :  { %1014 = vmatpush.msrb.mxu3 %v1584_v46  ;;  %991 = vmatpush.msrb.mxu2 %v1546_v10 }
 0x9bd   :  { %914 = vmatpush.msrb.mxu1 %v1609_v54 }
 0x9be   :  { %1015 = vmatpush.msrb.mxu3 %v1587_v47  ;;  %992 = vmatpush.msrb.mxu2 %v1550_v11 }
 0x9c0   :  { %1016 = vmatpush.msrb.mxu3 %v1590_v48 }
 0xa33   :  { %v616_v32 = vpop.f32.mrf.mxu1 }
 0xa34   :  { %v619_v10 = vadd.f32 %v616_v32, %v1751_v8 }
 0xa39   :  { %v637_v5 = vpop.f32.mrf.mxu2 }
 0xa3a   :  { %v638_v30 = vadd.f32 %v1641_v56, %v637_v5 }
 0xa3c   :  { %v663_v33 = vpop.f32.mrf.mxu3 }
 0xa3d   :  { %v666_v34 = vadd.f32 %v663_v33, %v638_v30 }
 0xa3f   :  { %v668_v35 = vrot.slane %v666_v34, 6 }
 0xa41   :  { %v670_v36 = vsel %vm291_vm9, %v619_v10, %v668_v35 }
 0xa42   :  { %1336 = vtanh.f32 %v670_v36  ;;  %v1264_v11 = vmul.f32 -1.442695, %v670_v36 }
 0xa44   :  { %1338 = vpow2.f32 %v1264_v11 }
 0xa48   :  { %v1337_v37 = vpop.eup %1336 }
 0xa49   :  { %693 = vrot.lane.b32.xlu0 %v1337_v37, %s1494_s11 }
 0xa4a   :  { %v1339_v38 = vpop.eup %1338 }
 0xa4b   :  { %v674_v39 = vadd.f32 1.0, %v1339_v38 }
 0xa4d   :  { %1340 = vrcp.f32 %v674_v39  ;;  %v686_v42 = vand.u32 2147483648, %v674_v39  ;;  %vm680_vm11 = vweird.f32 %v674_v39  ;;  %v684_v43 = vand.u32 2147483647, %v674_v39 }
 0xa4f   :  { %v687_v49 = vor.u32 1.1754944e-38, %v686_v42  ;;  %vm685_vm13 = vcmp.eq.f32.partialorder %v684_v43, 8.507059e+37 }
 0xa53   :  { %v1341_v15 = vpop.eup %1340 }
 0xa54   :  { %v676_v40 = vmul.f32 %v1341_v15, %v674_v39  ;;  %vm681_vm10 = vweird.f32 %v1341_v15 }
 0xa55   :  { %vm682_vm12 = vmor %vm680_vm11, %vm681_vm10 }
 0xa56   :  { %v677_v41 = vsub.f32 1.0, %v676_v40 }
 0xa58   :  { %v678_v20 = vmul.f32 %v1341_v15, %v677_v41 }
 0xa5a   :  { %v679_v12 = vadd.f32 %v1341_v15, %v678_v20 }
 0xa5c   :  { %v683_v44 = vsel %vm682_vm12, %v1341_v15, %v679_v12 }
 0xa5d   :  { %v688_v55 = vsel %vm685_vm13, %v687_v49, %v683_v44 }
 0xa5e   :  { %v708_v58 = vmul.f32 %v688_v55, %v1725_v19  ;;  %v691_v59 = vmul.f32 %v688_v55, %v1723_v18 }
 0xabb   :  { %v694_v50 = vpop.permute.xlu0 %693 }
 0xabc   :  { %v696_v57 = vmul.f32 %v694_v50, %v688_v55 }
 0xabe   :  { %698 = vrot.lane.b32.xlu1 %v696_v57, %s1495_s12 }
 0xb30   :  { %v699_v60 = vpop.permute.xlu1 %698 }
 0xb31   :  { %v1759_v61 = vadd.f32 %v699_v60, %v691_v59  ;;  %v1761_v62 = vadd.f32 %v708_v58, %v699_v60 }
 0xb33   :  { %1342 = vtanh.f32 %v1759_v61 }
 0xb34   :  { %1344 = vtanh.f32 %v1761_v62 }
 0xb39   :  { %v1343_v63 = vpop.eup %1342 }
 0xb3a   :  { %v1345_v0 = vpop.eup %1344  ;;  %704 = vrot.lane.b32.xlu0 %v1343_v63, %s1494_s11 }
 0xb3b   :  { %712 = vrot.lane.b32.xlu2 %v1345_v0, %s1494_s11 }
 0xb95   :  { %v713_v1 = vpop.permute.xlu2 %712 }
 0xb96   :  { %v715_v2 = vmul.f32 %v713_v1, %v688_v55 }
 0xb98   :  { %v766_v23 = vrot.slane %v715_v2, 2 }
 0xb9a   :  { %767 = vrot.lane.b32.xlu1 %v766_v23, %s1495_s12 }
 0xbac   :  { %v705_v3 = vpop.permute.xlu0 %704 }
 0xbad   :  { %v707_v4 = vmul.f32 %v705_v3, %v688_v55 }
 0xbaf   :  { %717 = vrot.lane.b32.xlu2 %v707_v4, %s1495_s12 }
 0xc09   :  { %v718_v6 = vpop.permute.xlu2 %717 }
 0xc0a   :  { %1265 = vmatmul.msk.f32.vlgmr.msra.gmra.mxu0 %vm152_vm8, %v718_v6  ;;  %1266 = vmatmul.msk.f32.vlgmr.msra.gmra.mxu1 %vm152_vm8, %v718_v6 }
 0xc0b   :  { %1039 = vmatpush.msra.mxu0 %v1599_v51  ;;  %1117 = vmatpush.msra.mxu1 %v1582_v45 }
 0xc0c   :  { %v768_v7 = vpop.permute.xlu1 %767 }
 0xc0d   :  { %1267 = vmatmul.msk.f32.vlgmr.msra.gmra.mxu2 %vm152_vm8, %v768_v7  ;;  %1040 = vmatpush.msra.mxu0 %v1601_v52 }
 0xc0e   :  { %1143 = vmatpush.msra.mxu2 %v1599_v51  ;;  %1118 = vmatpush.msra.mxu1 %v1584_v46 }
 0xc0f   :  { %1041 = vmatpush.msra.mxu0 %v1605_v53 }
 0xc10   :  { %1144 = vmatpush.msra.mxu2 %v1601_v52  ;;  %1119 = vmatpush.msra.mxu1 %v1587_v47 }
 0xc11   :  { %1042 = vmatpush.msra.mxu0 %v1609_v54 }
 0xc12   :  { %1145 = vmatpush.msra.mxu2 %v1605_v53  ;;  %1120 = vmatpush.msra.mxu1 %v1590_v48 }
 0xc14   :  { %1146 = vmatpush.msra.mxu2 %v1609_v54 }
 0xc87   :  { %v738_v45 = vpop.f32.mrf.mxu0  ;;  %v762_v13 = vpop.f32.mrf.mxu1 }
 0xc88   :  { %v742_v9 = vrot.slane %v738_v45, 6  ;;  %v763_v46 = vadd.f32 %v1641_v56, %v762_v13 }
 0xc8a   :  { %v744_v51 = vadd.f32 %v742_v9, %v1751_v8 }
 0xc8c   :  { %v793_v52 = vrot.slane %v744_v51, 2 }
 0xc90   :  { %v788_v14 = vpop.f32.mrf.mxu2 }
 0xc91   :  { %v791_v16 = vadd.f32 %v788_v14, %v763_v46 }
 0xc93   :  { %v796_v17 = vrot.slane %v791_v16, 6 }
 0xc95   :  { %v798_v47 = vsel %vm291_vm9, %v793_v52, %v796_v17 }
 0xc96   :  { %1346 = vtanh.f32 %v798_v47  ;;  %v1268_v48 = vmul.f32 -1.442695, %v798_v47 }
 0xc98   :  { %1348 = vpow2.f32 %v1268_v48 }
 0xc9c   :  { %v1347_v18 = vpop.eup %1346 }
 0xc9d   :  { %821 = vrot.lane.b32.xlu0 %v1347_v18, %s1494_s11 }
 0xc9e   :  { %v1349_v53 = vpop.eup %1348 }
 0xc9f   :  { %v802_v54 = vadd.f32 1.0, %v1349_v53 }
 0xca1   :  { %1350 = vrcp.f32 %v802_v54  ;;  %v814_v24 = vand.u32 2147483648, %v802_v54  ;;  %vm808_vm15 = vweird.f32 %v802_v54  ;;  %v812_v25 = vand.u32 2147483647, %v802_v54 }
 0xca3   :  { %v815_v29 = vor.u32 1.1754944e-38, %v814_v24  ;;  %vm813_vm1 = vcmp.eq.f32.partialorder %v812_v25, 8.507059e+37 }
 0xca7   :  { %v1351_v19 = vpop.eup %1350 }
 0xca8   :  { %v804_v21 = vmul.f32 %v1351_v19, %v802_v54  ;;  %vm809_vm14 = vweird.f32 %v1351_v19 }
 0xca9   :  { %vm810_vm0 = vmor %vm808_vm15, %vm809_vm14 }
 0xcaa   :  { %v805_v22 = vsub.f32 1.0, %v804_v21 }
 0xcac   :  { %v806_v26 = vmul.f32 %v1351_v19, %v805_v22 }
 0xcae   :  { %v807_v27 = vadd.f32 %v1351_v19, %v806_v26 }
 0xcb0   :  { %v811_v28 = vsel %vm810_vm0, %v1351_v19, %v807_v27 }
 0xcb1   :  { %v816_v5 = vsel %vm813_vm1, %v815_v29, %v811_v28 }
 0xcb2   :  { %v836_v32 = vmul.f32 %v816_v5, %v1761_v62  ;;  %v819_v33 = vmul.f32 %v816_v5, %v1759_v61 }
 0xd0f   :  { %v822_v31 = vpop.permute.xlu0 %821 }
 0xd10   :  { %v824_v30 = vmul.f32 %v822_v31, %v816_v5 }
 0xd12   :  { %826 = vrot.lane.b32.xlu1 %v824_v30, %s1495_s12 }
 0xd84   :  { %v827_v34 = vpop.permute.xlu1 %826 }
 0xd85   :  { %v829_v10 = vadd.f32 %v827_v34, %v819_v33  ;;  %v837_v35 = vadd.f32 %v836_v32, %v827_v34 }
 0xd87   :  { %1352 = vtanh.f32 %v829_v10 }
 0xd88   :  { %1354 = vtanh.f32 %v837_v35 }
 0xd8d   :  { %v1353_v36 = vpop.eup %1352 }
 0xd8e   :  { %v1355_v37 = vpop.eup %1354  ;;  %832 = vrot.lane.b32.xlu2 %v1353_v36, %s1494_s11 }
 0xd8f   :  { %840 = vrot.lane.b32.xlu0 %v1355_v37, %s1494_s11 }
 0xde8   :  { %v833_v11 = vpop.permute.xlu2 %832 }
 0xde9   :  { %v835_v38 = vmul.f32 %v833_v11, %v816_v5 }
 0xdeb   :  { %845 = vrot.lane.b32.xlu1 %v835_v38, %s1495_s12 }
 0xe01   :  { %v841_v39 = vpop.permute.xlu0 %840 }
 0xe02   :  { %v843_v15 = vmul.f32 %v841_v39, %v816_v5 }
 0xe04   :  { %v894_v40 = vrot.slane %v843_v15, 2 }
 0xe06   :  { %895 = vrot.lane.b32.xlu2 %v894_v40, %s1495_s12 }
 0xe5d   :  { %v846_v41 = vpop.permute.xlu1 %845 }
 0xe5e   :  { %1269 = vmatmul.msk.f32.vlgmr.msra.gmra.mxu3 %vm152_vm8, %v846_v41  ;;  %1270 = vmatmul.msk.f32.vlgmr.msrb.gmra.mxu0 %vm152_vm8, %v846_v41 }
 0xe60   :  { %v896_v20 = vpop.permute.xlu2 %895 }
 0xe61   :  { %1271 = vmatmul.msk.f32.vlgmr.msrb.gmra.mxu1 %vm152_vm8, %v896_v20 }
 0xedb   :  { %v890_v12 = vpop.f32.mrf.mxu0 }
 0xedc   :  { %v891_v42 = vadd.f32 %v1641_v56, %v890_v12 }
 0xede   :  { %v916_v43 = vpop.f32.mrf.mxu1 }
 0xedf   :  { %v919_v49 = vadd.f32 %v916_v43, %v891_v42 }
 0xee1   :  { %v866_v44 = vpop.f32.mrf.mxu3  ;;  %v924_v57 = vrot.slane %v919_v49, 6 }
 0xee2   :  { %v870_v50 = vrot.slane %v866_v44, 4 }
 0xee4   :  { %v872_v55 = vadd.f32 %v870_v50, %v1751_v8 }
 0xee6   :  { %v921_v58 = vrot.slane %v872_v55, 4 }
 0xee8   :  { %v926_v59 = vsel %vm291_vm9, %v921_v58, %v924_v57 }
 0xee9   :  { %1356 = vtanh.f32 %v926_v59  ;;  %v1272_v61 = vmul.f32 -1.442695, %v926_v59 }
 0xeeb   :  { %1358 = vpow2.f32 %v1272_v61 }
 0xeef   :  { %v1357_v60 = vpop.eup %1356 }
 0xef0   :  { %949 = vrot.lane.b32.xlu0 %v1357_v60, %s1494_s11 }
 0xef1   :  { %v1359_v62 = vpop.eup %1358 }
 0xef2   :  { %v930_v63 = vadd.f32 1.0, %v1359_v62 }
 0xef4   :  { %1360 = vrcp.f32 %v930_v63  ;;  %v942_v4 = vand.u32 2147483648, %v930_v63  ;;  %vm936_vm4 = vweird.f32 %v930_v63  ;;  %v940_v6 = vand.u32 2147483647, %v930_v63 }
 0xef6   :  { %v943_v45 = vor.u32 1.1754944e-38, %v942_v4  ;;  %vm941_vm5 = vcmp.eq.f32.partialorder %v940_v6, 8.507059e+37 }
 0xefa   :  { %v1361_v0 = vpop.eup %1360 }
 0xefb   :  { %v932_v1 = vmul.f32 %v1361_v0, %v930_v63  ;;  %vm937_vm2 = vweird.f32 %v1361_v0 }
 0xefc   :  { %vm938_vm3 = vmor %vm936_vm4, %vm937_vm2 }
 0xefd   :  { %v933_v2 = vsub.f32 1.0, %v932_v1 }
 0xeff   :  { %v934_v23 = vmul.f32 %v1361_v0, %v933_v2 }
 0xf01   :  { %v935_v3 = vadd.f32 %v1361_v0, %v934_v23 }
 0xf03   :  { %v939_v7 = vsel %vm938_vm3, %v1361_v0, %v935_v3 }
 0xf04   :  { %v944_v13 = vsel %vm941_vm5, %v943_v45, %v939_v7 }
 0xf05   :  { %v964_v46 = vmul.f32 %v944_v13, %v837_v35  ;;  %v947_v14 = vmul.f32 %v944_v13, %v829_v10 }
 0xf62   :  { %v950_v9 = vpop.permute.xlu0 %949 }
 0xf63   :  { %v952_v51 = vmul.f32 %v950_v9, %v944_v13 }
 0xf65   :  { %954 = vrot.lane.b32.xlu1 %v952_v51, %s1495_s12 }
 0xfd7   :  { %v955_v16 = vpop.permute.xlu1 %954 }
 0xfd8   :  { %v957_v52 = vadd.f32 %v955_v16, %v947_v14  ;;  %v965_v17 = vadd.f32 %v964_v46, %v955_v16 }
 0xfda   :  { %1362 = vtanh.f32 %v957_v52 }
 0xfdb   :  { %1364 = vtanh.f32 %v965_v17 }
 0xfe0   :  { %v1363_v47 = vpop.eup %1362 }
 0xfe1   :  { %v1365_v18 = vpop.eup %1364  ;;  %960 = vrot.lane.b32.xlu2 %v1363_v47, %s1494_s11 }
 0xfe2   :  { %968 = vrot.lane.b32.xlu0 %v1365_v18, %s1494_s11 }
0x103b   :  { %v961_v48 = vpop.permute.xlu2 %960 }
0x103c   :  { %v963_v53 = vmul.f32 %v961_v48, %v944_v13 }
0x103e   :  { %973 = vrot.lane.b32.xlu1 %v963_v53, %s1495_s12 }
0x1054   :  { %v969_v54 = vpop.permute.xlu0 %968 }
0x1055   :  { %v971_v19 = vmul.f32 %v969_v54, %v944_v13 }
0x1057   :  { %v1022_v21 = vrot.slane %v971_v19, 2 }
0x1059   :  { %1023 = vrot.lane.b32.xlu2 %v1022_v21, %s1495_s12 }
0x10b0   :  { %v974_v22 = vpop.permute.xlu1 %973 }
0x10b1   :  { %1273 = vmatmul.msk.f32.vlgmr.msrb.gmra.mxu2 %vm152_vm8, %v974_v22  ;;  %1274 = vmatmul.msk.f32.vlgmr.msrb.gmra.mxu3 %vm152_vm8, %v974_v22 }
0x10b3   :  { %v1024_v26 = vpop.permute.xlu2 %1023 }
0x10b4   :  { %1275 = vmatmul.msk.f32.vlgmr.msra.gmra.mxu0 %vm152_vm8, %v1024_v26 }
0x1131   :  { %v1044_v29 = vpop.f32.mrf.mxu0 }
0x1134   :  { %v994_v27 = vpop.f32.mrf.mxu2  ;;  %v1018_v24 = vpop.f32.mrf.mxu3 }
0x1135   :  { %v998_v25 = vrot.slane %v994_v27, 2  ;;  %v1019_v28 = vadd.f32 %v1641_v56, %v1018_v24  ;;  %v1195_v24 = vld [vmem:[#allocation7 + $0x18] sm:$0xff] }
0x1136   :  { %1215 = vmatpush.msra.mxu3 %v1195_v24 }
0x1137   :  { %v1000_v31 = vadd.f32 %v998_v25, %v1751_v8  ;;  %v1047_v5 = vadd.f32 %v1044_v29, %v1019_v28  ;;  %v1194_v25 = vld [vmem:[#allocation7 + $0x10] sm:$0xff]  ;;  %v1193_v28 = vld [vmem:[#allocation7 + $0x8] sm:$0xff]  ;;  %v1192_v29 = vld [vmem:[#allocation7] sm:$0xff] }
0x1138   :  { %1216 = vmatpush.msra.mxu3 %v1194_v25 }
0x1139   :  { %v1049_v30 = vrot.slane %v1000_v31, 6  ;;  %v1052_v32 = vrot.slane %v1047_v5, 6 }
0x113a   :  { %1217 = vmatpush.msra.mxu3 %v1193_v28 }
0x113b   :  { %v1054_v33 = vsel %vm291_vm9, %v1049_v30, %v1052_v32  ;;  %v1297_v32 = vld [vmem:[#allocation7 + $0x20] ss:$0 sm:$0xff] }
0x113c   :  { %1366 = vtanh.f32 %v1054_v33  ;;  %v1276_v10 = vmul.f32 -1.442695, %v1054_v33  ;;  %1218 = vmatpush.msra.mxu3 %v1192_v29 }
0x113e   :  { %1368 = vpow2.f32 %v1276_v10 }
0x1142   :  { %v1367_v34 = vpop.eup %1366 }
0x1143   :  { %1077 = vrot.lane.b32.xlu0 %v1367_v34, %s1494_s11 }
0x1144   :  { %v1369_v35 = vpop.eup %1368 }
0x1145   :  { %v1058_v36 = vadd.f32 1.0, %v1369_v35 }
0x1147   :  { %1370 = vrcp.f32 %v1058_v36  ;;  %v1070_v8 = vand.u32 2147483648, %v1058_v36  ;;  %vm1064_vm7 = vweird.f32 %v1058_v36  ;;  %v1068_v40 = vand.u32 2147483647, %v1058_v36 }
0x1149   :  { %v1071_v20 = vor.u32 1.1754944e-38, %v1070_v8  ;;  %vm1069_vm9 = vcmp.eq.f32.partialorder %v1068_v40, 8.507059e+37 }
0x114d   :  { %v1371_v37 = vpop.eup %1370 }
0x114e   :  { %v1060_v11 = vmul.f32 %v1371_v37, %v1058_v36  ;;  %vm1065_vm6 = vweird.f32 %v1371_v37 }
0x114f   :  { %vm1066_vm10 = vmor %vm1064_vm7, %vm1065_vm6 }
0x1150   :  { %v1061_v38 = vsub.f32 1.0, %v1060_v11 }
0x1152   :  { %v1062_v39 = vmul.f32 %v1371_v37, %v1061_v38 }
0x1154   :  { %v1063_v15 = vadd.f32 %v1371_v37, %v1062_v39 }
0x1156   :  { %v1067_v41 = vsel %vm1066_vm10, %v1371_v37, %v1063_v15 }
0x1157   :  { %v1072_v42 = vsel %vm1069_vm9, %v1071_v20, %v1067_v41 }
0x1158   :  { %v1092_v44 = vmul.f32 %v1072_v42, %v965_v17  ;;  %v1075_v49 = vmul.f32 %v1072_v42, %v957_v52 }
0x11b5   :  { %v1078_v12 = vpop.permute.xlu0 %1077 }
0x11b6   :  { %v1080_v43 = vmul.f32 %v1078_v12, %v1072_v42 }
0x11b8   :  { %1082 = vrot.lane.b32.xlu1 %v1080_v43, %s1495_s12 }
0x122a   :  { %v1083_v50 = vpop.permute.xlu1 %1082 }
0x122b   :  { %v1085_v55 = vadd.f32 %v1083_v50, %v1075_v49  ;;  %v1093_v57 = vadd.f32 %v1092_v44, %v1083_v50 }
0x122d   :  { %1372 = vtanh.f32 %v1085_v55  ;;  %v1173_v19 = vrot.slane %v1093_v57, 2 }
0x122e   :  { %1374 = vtanh.f32 %v1093_v57 }
0x1233   :  { %v1373_v58 = vpop.eup %1372 }
0x1234   :  { %v1375_v59 = vpop.eup %1374  ;;  %1088 = vrot.lane.b32.xlu0 %v1373_v58, %s1494_s11 }
0x1235   :  { %1096 = vrot.lane.b32.xlu2 %v1375_v59, %s1494_s11 }
0x128f   :  { %v1097_v60 = vpop.permute.xlu2 %1096 }
0x1290   :  { %v1099_v61 = vmul.f32 %v1097_v60, %v1072_v42 }
0x1292   :  { %v1126_v62 = vrot.slane %v1099_v61, 2 }
0x1294   :  { %1127 = vrot.lane.b32.xlu1 %v1126_v62, %s1495_s12 }
0x12a6   :  { %v1089_v63 = vpop.permute.xlu0 %1088 }
0x12a7   :  { %v1091_v0 = vmul.f32 %v1089_v63, %v1072_v42 }
0x12a9   :  { %1101 = vrot.lane.b32.xlu2 %v1091_v0, %s1495_s12 }
0x1303   :  { %v1102_v1 = vpop.permute.xlu2 %1101 }
0x1304   :  { %1277 = vmatmul.msk.f32.vlgmr.msra.gmra.mxu1 %vm152_vm8, %v1102_v1 }
0x1306   :  { %v1128_v2 = vpop.permute.xlu1 %1127 }
0x1307   :  { %1278 = vmatmul.msk.f32.vlgmr.msra.gmra.mxu2 %vm152_vm8, %v1128_v2 }
0x1381   :  { %v1122_v23 = vpop.f32.mrf.mxu1 }
0x1382   :  { %v1123_v3 = vadd.f32 %v1641_v56, %v1122_v23 }
0x138a   :  { %v1148_v4 = vpop.f32.mrf.mxu2 }
0x138b   :  { %v1151_v6 = vadd.f32 %v1148_v4, %v1123_v3 }
0x138d   :  { %1376 = vtanh.f32 %v1151_v6  ;;  %v1279_v45 = vmul.f32 -1.442695, %v1151_v6 }
0x138f   :  { %1378 = vpow2.f32 %v1279_v45 }
0x1393   :  { %v1377_v7 = vpop.eup %1376 }
0x1394   :  { %1177 = vrot.lane.b32.xlu0 %v1377_v7, %s1494_s11 }
0x1395   :  { %v1379_v9 = vpop.eup %1378 }
0x1396   :  { %v1155_v13 = vadd.f32 1.0, %v1379_v9 }
0x1398   :  { %1380 = vrcp.f32 %v1155_v13  ;;  %v1167_v17 = vand.u32 2147483648, %v1155_v13  ;;  %vm1161_vm12 = vweird.f32 %v1155_v13  ;;  %v1165_v56 = vand.u32 2147483647, %v1155_v13 }
0x139a   :  { %v1168_v18 = vor.u32 1.1754944e-38, %v1167_v17  ;;  %vm1166_vm14 = vcmp.eq.f32.partialorder %v1165_v56, 8.507059e+37 }
0x139e   :  { %v1381_v51 = vpop.eup %1380 }
0x139f   :  { %v1157_v46 = vmul.f32 %v1381_v51, %v1155_v13  ;;  %vm1162_vm11 = vweird.f32 %v1381_v51 }
0x13a0   :  { %vm1163_vm13 = vmor %vm1161_vm12, %vm1162_vm11 }
0x13a1   :  { %v1158_v14 = vsub.f32 1.0, %v1157_v46 }
0x13a3   :  { %v1159_v16 = vmul.f32 %v1381_v51, %v1158_v14 }
0x13a5   :  { %v1160_v52 = vadd.f32 %v1381_v51, %v1159_v16 }
0x13a7   :  { %v1164_v47 = vsel %vm1163_vm13, %v1381_v51, %v1160_v52 }
0x13a8   :  { %v1169_v53 = vsel %vm1166_vm14, %v1168_v18, %v1164_v47 }
0x13a9   :  { %v1175_v21 = vmul.f32 %v1173_v19, %v1169_v53 }
0x1406   :  { %v1178_v48 = vpop.permute.xlu0 %1177 }
0x1407   :  { %v1180_v54 = vmul.f32 %v1178_v48, %v1169_v53 }
0x1409   :  { %1182 = vrot.lane.b32.xlu1 %v1180_v54, %s1495_s12 }
0x147b   :  { %v1183_v22 = vpop.permute.xlu1 %1182 }
0x147c   :  { %v1185_v26 = vadd.f32 %v1183_v22, %v1175_v21 }
0x147e   :  { %1382 = vtanh.f32 %v1185_v26 }
0x1484   :  { %v1383_v27 = vpop.eup %1382 }
0x1485   :  { %1188 = vrot.lane.b32.xlu2 %v1383_v27, %s1494_s11 }
0x14df   :  { %v1189_v31 = vpop.permute.xlu2 %1188 }
0x14e0   :  { %v1191_v5 = vmul.f32 %v1189_v31, %v1169_v53 }
0x14e2   :  { %1199 = vrot.lane.b32.xlu0 %v1191_v5, %s1495_s12 }
0x1554   :  { %v1200_v30 = vpop.permute.xlu0 %1199 }
0x1555   :  { %1280 = vmatmul.msk.f32.vlgmr.msra.gmra.mxu3 %vm152_vm8, %v1200_v30 }
0x15d8   :  { %v1220_v33 = vpop.f32.mrf.mxu3 }
0x15d9   :  { %v1221_v34 = vadd.f32 %v1297_v32, %v1220_v33 }
0x15db   :  { %1223 = vst [vmem:[#allocation8] sm:$0x3] %v1221_v34 }
0x15dc   :  { %1234 = dma.vmem_to_hbm [thread:$0]  %s1230_s16, 32, %s1232_s19, [#allocation4]  }
0x15dd   :  { %1484 = dma.done.wait [#allocation4], 32  }
0x15de   :  { %1485 = vsyncadd [#allocation4], 4294967264 }
0x15df   :  { %1239 = vsyncpa [#allocation3], 1 }
0x15e0   :  { %1240 = vsyncpa [#allocation6], 1 }
0x15e1   :  { %1241 = vsyncpa [#allocation4], 1 }

</bundles_post_ra>
